<compile_context>
chip_gen: v7x
topology: tpu7x:2x2x1
jax: 0.10.0
libtpu: 0.0.40
codegen_flags: <defaults>
</compile_context>

<pallas_src>
import jax
import jax.numpy as jnp
from jax import lax
from jax.experimental import pallas as pl
from jax.experimental.pallas import tpu as pltpu

EPS = 1e-5


def _shift_lanes(y, s):
    """T[:, m] = y[:, m + s] where defined, zero fill elsewhere (s is a static int)."""
    if s == 0:
        return y
    c, m = y.shape
    if s > 0:
        return jnp.concatenate([y[:, s:], jnp.zeros((c, s), y.dtype)], axis=1)
    return jnp.concatenate([jnp.zeros((c, -s), y.dtype), y[:, :m + s]], axis=1)


def dblock_kernel(xph_ref, wd_ref, bd_ref, w1_ref, g1_ref, b1_ref,
                  w2_ref, g2_ref, b2_ref, wr_ref, br_ref, out_ref):
    # xph_ref: (N, 4, H2+1, W2+1, Cin)  phase-split, zero-padded input
    # weights (bf16, channel-major): wd (Cout, 9*Cin), w1/w2 (Cout, 9*Cout), wr (Cout, Cout)
    # per-channel params are (Cout, 1); out_ref is (Cout, N*H2*W2)  (channel-major)
    N, _, HP, WP, Cin = xph_ref.shape
    Cout, M = out_ref.shape
    H2, W2 = HP - 1, WP - 1
    P = H2 * W2
    assert M == N * P and (H2 & (H2 - 1)) == 0 and (W2 & (W2 - 1)) == 0

    # ---- down: Conv2d(Cin, Cout, 3, stride=2, pad=1) + bias, as ONE matmul ----
    cols = []
    for dy in range(3):
        qr, pr = divmod(dy, 2)
        for dx in range(3):
            qc, pc = divmod(dx, 2)
            tap = xph_ref[:, 2 * pr + pc, qr:qr + H2, qc:qc + W2, :]   # (N, H2, W2, Cin)
            cols.append(tap.reshape(M, Cin))
    im2col = jnp.concatenate(cols, axis=1).astype(jnp.bfloat16)        # (M, 9*Cin)
    # y_down[c, m] = sum_k wd[c, k] * im2col[m, k]   -> channel-major (Cout, M)
    y_down = lax.dot_general(wd_ref[...], im2col, (((1,), (1,)), ((), ())),
                             preferred_element_type=jnp.float32) + bd_ref[...]

    # ---- lane -> (h, w) decomposition + 3x3 tap masks, shared by both convs ----
    lane = lax.broadcasted_iota(jnp.int32, (Cout, M), 1)    # m = n*P + h*W2 + w
    w_id = lane & (W2 - 1)
    h_id = (lane >> (W2 - 1).bit_length()) & (H2 - 1)
    masks, shifts = [], []
    for dy in range(3):
        for dx in range(3):
            masks.append((h_id + dy >= 1) & (h_id + dy <= H2) &
                         (w_id + dx >= 1) & (w_id + dx <= W2))
            shifts.append((dy - 1) * W2 + (dx - 1))

    def conv3x3_gn_relu(y, w_ref, g_ref, b_ref):
        # 3x3 / stride 1 / pad 1 / no bias  ->  GroupNorm(1)  ->  ReLU  (channel-major)
        taps = [jnp.where(m, _shift_lanes(y, s), 0.0) for m, s in zip(masks, shifts)]
        b_mat = jnp.concatenate(taps, axis=0).astype(jnp.bfloat16)     # (9*Cout, M)
        pre = jnp.dot(w_ref[...], b_mat, preferred_element_type=jnp.float32)
        outs = []
        cnt = Cout * P
        for n in range(N):                                  # per-sample GroupNorm(1)
            yn = pre[:, n * P:(n + 1) * P]
            mean = jnp.sum(yn) / cnt
            var = jnp.sum(yn * yn) / cnt - mean * mean      # one-pass statistics
            z = (yn - mean) * lax.rsqrt(var + EPS)
            outs.append(jnp.maximum(z * g_ref[...] + b_ref[...], 0.0))
        return jnp.concatenate(outs, axis=1)                # (Cout, M)

    y1 = conv3x3_gn_relu(y_down, w1_ref, g1_ref, b1_ref)
    y2 = conv3x3_gn_relu(y1, w2_ref, g2_ref, b2_ref)

    # ---- residual branch: 1x1 conv (with bias) on the down-conv output ----
    y_res = jnp.dot(wr_ref[...], y_down.astype(jnp.bfloat16),
                    preferred_element_type=jnp.float32) + br_ref[...]

    out_ref[...] = (y2 + y_res).astype(out_ref.dtype)       # dense (Cout, M) store


def dblock_forward(x_nhwc, params):
    N, H, W, Cin = x_nhwc.shape
    assert H % 2 == 0 and W % 2 == 0
    H2, W2 = H // 2, W // 2
    Cout = params["wd"].shape[-1]
    M = N * H2 * W2
    bf16 = jnp.bfloat16

    # glue (pure layout work, no duplication): zero-pad and split the padded image
    # into its 4 stride-2 phases so every down-conv tap is a contiguous static slice.
    xp = jnp.pad(x_nhwc, ((0, 0), (1, 1), (1, 1), (0, 0)))            # (N, H+2, W+2, Cin)
    xph = xp.reshape(N, H2 + 1, 2, W2 + 1, 2, Cin)
    xph = xph.transpose(0, 2, 4, 1, 3, 5).reshape(N, 4, H2 + 1, W2 + 1, Cin)

    # channel-major ("transposed") parameter layouts; matmul weights cast to bf16
    col = lambda v: v.reshape(Cout, 1).astype(jnp.float32)
    args = (xph,
            params["wd"].reshape(9 * Cin, Cout).T.astype(bf16), col(params["bd"]),
            params["w1"].reshape(9 * Cout, Cout).T.astype(bf16), col(params["g1"]), col(params["b1"]),
            params["w2"].reshape(9 * Cout, Cout).T.astype(bf16), col(params["g2"]), col(params["b2"]),
            params["wr"].T.astype(bf16), col(params["br"]))

    def full_spec(a):
        nd = a.ndim
        return pl.BlockSpec(a.shape, lambda i, _nd=nd: (0,) * _nd)

    out_cm = pl.pallas_call(
        dblock_kernel,
        out_shape=jax.ShapeDtypeStruct((Cout, M), jnp.float32),
        grid_spec=pltpu.PrefetchScalarGridSpec(
            num_scalar_prefetch=0,
            grid=(1,),                                   # whole batch in one grid step
            in_specs=[full_spec(a) for a in args],
            out_specs=pl.BlockSpec((Cout, M), lambda i: (0, 0))),
        compiler_params=pltpu.CompilerParams(dimension_semantics=("arbitrary",)),
    )(*args)

    # (Cout, N*H2*W2) channel-major -> NHWC
    return out_cm.reshape(Cout, N, H2, W2).transpose(1, 2, 3, 0)


def dblock_reference(x_nhwc, params):
    # pure-JAX reference of the same forward pass (NHWC), same one-pass bf16 matmuls
    dn = ('NHWC', 'HWIO', 'NHWC')
    bf16 = jnp.bfloat16

    def conv3(x, w_taps, stride):
        w = w_taps.reshape(3, 3, w_taps.shape[1], w_taps.shape[2])
        return lax.conv_general_dilated(
            x.astype(bf16), w.astype(bf16), (stride, stride), ((1, 1), (1, 1)),
            dimension_numbers=dn, preferred_element_type=jnp.float32)

    def gn_relu(y, g, b):
        mean = jnp.mean(y, axis=(1, 2, 3), keepdims=True)
        var = jnp.mean((y - mean) ** 2, axis=(1, 2, 3), keepdims=True)
        yn = (y - mean) * lax.rsqrt(var + EPS)
        return jnp.maximum(yn * g.reshape(1, 1, 1, -1) + b.reshape(1, 1, 1, -1), 0.0)

    y_down = conv3(x_nhwc, params["wd"], 2) + params["bd"].reshape(1, 1, 1, -1)
    y1 = gn_relu(conv3(y_down, params["w1"], 1), params["g1"], params["b1"])
    y2 = gn_relu(conv3(y1, params["w2"], 1), params["g2"], params["b2"])
    y_res = (jnp.einsum('nhwc,cd->nhwd', y_down.astype(bf16), params["wr"].astype(bf16),
                        preferred_element_type=jnp.float32)
             + params["br"].reshape(1, 1, 1, -1))
    return y2 + y_res


def make_params(key, cin, cout):
    ks = jax.random.split(key, 10)

    def rnd(k, shape, scale=0.1):
        return scale * jax.random.normal(k, shape, jnp.float32)

    return dict(
        # down: Conv2d(cin, cout, 3, stride=2, pad=1) -- torch weight (cout,cin,3,3) stored as (9,cin,cout)
        wd=rnd(ks[0], (9, cin, cout)),
        bd=rnd(ks[1], (1, cout)),
        # double_conv conv1 / conv2 (3x3, no bias) + GroupNorm(1, cout) affine params
        w1=rnd(ks[2], (9, cout, cout)),
        g1=1.0 + rnd(ks[3], (1, cout)),
        b1=rnd(ks[4], (1, cout)),
        w2=rnd(ks[5], (9, cout, cout)),
        g2=1.0 + rnd(ks[6], (1, cout)),
        b2=rnd(ks[7], (1, cout)),
        # res_conv: Conv2d(cout, cout, 1) with bias -- torch weight (cout,cout,1,1) stored as (cout,cout)
        wr=rnd(ks[8], (cout, cout)),
        br=rnd(ks[9], (1, cout)),
    )


if __name__ == "__main__":
    N, Cin, H, W, Cout = 2, 4, 16, 16, 8
    key = jax.random.PRNGKey(0)
    kx, kp = jax.random.split(key)

    # PyTorch-style NCHW input; kernel/reference layout is NHWC
    x_nchw = jax.random.normal(kx, (N, Cin, H, W), jnp.float32)
    x_nhwc = jnp.transpose(x_nchw, (0, 2, 3, 1))

    params = make_params(kp, Cin, Cout)

    out = dblock_forward(x_nhwc, params)
    out = jax.block_until_ready(out)

    ref = dblock_reference(x_nhwc, params)
    assert out.shape == (N, H // 2, W // 2, Cout), out.shape
    max_err = float(jnp.max(jnp.abs(out - ref)))
    # bf16 single-pass matmuls in both kernel and reference -> 2e-3 tolerance
    assert jnp.allclose(out, ref, atol=2e-3, rtol=2e-3), f"max abs err {max_err}"
    print("KERNEL_OK")
</pallas_src>

<mosaic_0001>
module attributes {stable_mosaic.version = 11 : i64} {
  func.func @dblock_kernel(%arg0: i32, %arg1: memref<2x4x9x9x4xf32, #tpu.memory_space<vmem>>, %arg2: memref<8x36xbf16, #tpu.memory_space<vmem>>, %arg3: memref<8x1xf32, #tpu.memory_space<vmem>>, %arg4: memref<8x72xbf16, #tpu.memory_space<vmem>>, %arg5: memref<8x1xf32, #tpu.memory_space<vmem>>, %arg6: memref<8x1xf32, #tpu.memory_space<vmem>>, %arg7: memref<8x72xbf16, #tpu.memory_space<vmem>>, %arg8: memref<8x1xf32, #tpu.memory_space<vmem>>, %arg9: memref<8x1xf32, #tpu.memory_space<vmem>>, %arg10: memref<8x8xbf16, #tpu.memory_space<vmem>>, %arg11: memref<8x1xf32, #tpu.memory_space<vmem>>, %arg12: memref<8x128xf32, #tpu.memory_space<vmem>>) attributes {dimension_semantics = [#tpu.dimension_semantics<arbitrary>], iteration_bounds = array<i64: 1>, scalar_prefetch = 0 : i64, scratch_operands = 0 : i64, tpu.core_type = #tpu.core_type<tc>, window_params = [{pipeline_mode = #tpu.pipeline_mode<synchronous>, transform_indices = @transform_0, window_bounds = array<i64: 2, 4, 9, 9, 4>}, {pipeline_mode = #tpu.pipeline_mode<synchronous>, transform_indices = @transform_1, window_bounds = array<i64: 8, 36>}, {pipeline_mode = #tpu.pipeline_mode<synchronous>, transform_indices = @transform_2, window_bounds = array<i64: 8, 1>}, {pipeline_mode = #tpu.pipeline_mode<synchronous>, transform_indices = @transform_3, window_bounds = array<i64: 8, 72>}, {pipeline_mode = #tpu.pipeline_mode<synchronous>, transform_indices = @transform_4, window_bounds = array<i64: 8, 1>}, {pipeline_mode = #tpu.pipeline_mode<synchronous>, transform_indices = @transform_5, window_bounds = array<i64: 8, 1>}, {pipeline_mode = #tpu.pipeline_mode<synchronous>, transform_indices = @transform_6, window_bounds = array<i64: 8, 72>}, {pipeline_mode = #tpu.pipeline_mode<synchronous>, transform_indices = @transform_7, window_bounds = array<i64: 8, 1>}, {pipeline_mode = #tpu.pipeline_mode<synchronous>, transform_indices = @transform_8, window_bounds = array<i64: 8, 1>}, {pipeline_mode = #tpu.pipeline_mode<synchronous>, transform_indices = @transform_9, window_bounds = array<i64: 8, 8>}, {pipeline_mode = #tpu.pipeline_mode<synchronous>, transform_indices = @transform_10, window_bounds = array<i64: 8, 1>}, {pipeline_mode = #tpu.pipeline_mode<synchronous>, transform_indices = @transform_11, window_bounds = array<i64: 8, 128>}]} {
    %c0 = arith.constant 0 : index
    %c0_0 = arith.constant 0 : index
    %c0_1 = arith.constant 0 : index
    %c0_2 = arith.constant 0 : index
    %c0_3 = arith.constant 0 : index
    %0 = vector.load %arg1[%c0, %c0_0, %c0_1, %c0_2, %c0_3] : memref<2x4x9x9x4xf32, #tpu.memory_space<vmem>>, vector<2x1x8x8x4xf32>
    %1 = vector.shape_cast %0 : vector<2x1x8x8x4xf32> to vector<2x8x8x4xf32>
    %2 = vector.shape_cast %1 : vector<2x8x8x4xf32> to vector<128x4xf32>
    %c0_4 = arith.constant 0 : index
    %c1 = arith.constant 1 : index
    %c0_5 = arith.constant 0 : index
    %c0_6 = arith.constant 0 : index
    %c0_7 = arith.constant 0 : index
    %3 = vector.load %arg1[%c0_4, %c1, %c0_5, %c0_6, %c0_7] : memref<2x4x9x9x4xf32, #tpu.memory_space<vmem>>, vector<2x1x8x8x4xf32>
    %4 = vector.shape_cast %3 : vector<2x1x8x8x4xf32> to vector<2x8x8x4xf32>
    %5 = vector.shape_cast %4 : vector<2x8x8x4xf32> to vector<128x4xf32>
    %c0_8 = arith.constant 0 : index
    %c0_9 = arith.constant 0 : index
    %c0_10 = arith.constant 0 : index
    %c1_11 = arith.constant 1 : index
    %c0_12 = arith.constant 0 : index
    %6 = vector.load %arg1[%c0_8, %c0_9, %c0_10, %c1_11, %c0_12] : memref<2x4x9x9x4xf32, #tpu.memory_space<vmem>>, vector<2x1x8x8x4xf32>
    %7 = vector.shape_cast %6 : vector<2x1x8x8x4xf32> to vector<2x8x8x4xf32>
    %8 = vector.shape_cast %7 : vector<2x8x8x4xf32> to vector<128x4xf32>
    %c0_13 = arith.constant 0 : index
    %c2 = arith.constant 2 : index
    %c0_14 = arith.constant 0 : index
    %c0_15 = arith.constant 0 : index
    %c0_16 = arith.constant 0 : index
    %9 = vector.load %arg1[%c0_13, %c2, %c0_14, %c0_15, %c0_16] : memref<2x4x9x9x4xf32, #tpu.memory_space<vmem>>, vector<2x1x8x8x4xf32>
    %10 = vector.shape_cast %9 : vector<2x1x8x8x4xf32> to vector<2x8x8x4xf32>
    %11 = vector.shape_cast %10 : vector<2x8x8x4xf32> to vector<128x4xf32>
    %c0_17 = arith.constant 0 : index
    %c3 = arith.constant 3 : index
    %c0_18 = arith.constant 0 : index
    %c0_19 = arith.constant 0 : index
    %c0_20 = arith.constant 0 : index
    %12 = vector.load %arg1[%c0_17, %c3, %c0_18, %c0_19, %c0_20] : memref<2x4x9x9x4xf32, #tpu.memory_space<vmem>>, vector<2x1x8x8x4xf32>
    %13 = vector.shape_cast %12 : vector<2x1x8x8x4xf32> to vector<2x8x8x4xf32>
    %14 = vector.shape_cast %13 : vector<2x8x8x4xf32> to vector<128x4xf32>
    %c0_21 = arith.constant 0 : index
    %c2_22 = arith.constant 2 : index
    %c0_23 = arith.constant 0 : index
    %c1_24 = arith.constant 1 : index
    %c0_25 = arith.constant 0 : index
    %15 = vector.load %arg1[%c0_21, %c2_22, %c0_23, %c1_24, %c0_25] : memref<2x4x9x9x4xf32, #tpu.memory_space<vmem>>, vector<2x1x8x8x4xf32>
    %16 = vector.shape_cast %15 : vector<2x1x8x8x4xf32> to vector<2x8x8x4xf32>
    %17 = vector.shape_cast %16 : vector<2x8x8x4xf32> to vector<128x4xf32>
    %c0_26 = arith.constant 0 : index
    %c0_27 = arith.constant 0 : index
    %c1_28 = arith.constant 1 : index
    %c0_29 = arith.constant 0 : index
    %c0_30 = arith.constant 0 : index
    %18 = vector.load %arg1[%c0_26, %c0_27, %c1_28, %c0_29, %c0_30] : memref<2x4x9x9x4xf32, #tpu.memory_space<vmem>>, vector<2x1x8x8x4xf32>
    %19 = vector.shape_cast %18 : vector<2x1x8x8x4xf32> to vector<2x8x8x4xf32>
    %20 = vector.shape_cast %19 : vector<2x8x8x4xf32> to vector<128x4xf32>
    %c0_31 = arith.constant 0 : index
    %c1_32 = arith.constant 1 : index
    %c1_33 = arith.constant 1 : index
    %c0_34 = arith.constant 0 : index
    %c0_35 = arith.constant 0 : index
    %21 = vector.load %arg1[%c0_31, %c1_32, %c1_33, %c0_34, %c0_35] : memref<2x4x9x9x4xf32, #tpu.memory_space<vmem>>, vector<2x1x8x8x4xf32>
    %22 = vector.shape_cast %21 : vector<2x1x8x8x4xf32> to vector<2x8x8x4xf32>
    %23 = vector.shape_cast %22 : vector<2x8x8x4xf32> to vector<128x4xf32>
    %c0_36 = arith.constant 0 : index
    %c0_37 = arith.constant 0 : index
    %c1_38 = arith.constant 1 : index
    %c1_39 = arith.constant 1 : index
    %c0_40 = arith.constant 0 : index
    %24 = vector.load %arg1[%c0_36, %c0_37, %c1_38, %c1_39, %c0_40] : memref<2x4x9x9x4xf32, #tpu.memory_space<vmem>>, vector<2x1x8x8x4xf32>
    %25 = vector.shape_cast %24 : vector<2x1x8x8x4xf32> to vector<2x8x8x4xf32>
    %26 = vector.shape_cast %25 : vector<2x8x8x4xf32> to vector<128x4xf32>
    %27 = tpu.concatenate %2, %5, %8, %11, %14, %17, %20, %23, %26 in 1 : vector<128x4xf32>, vector<128x4xf32>, vector<128x4xf32>, vector<128x4xf32>, vector<128x4xf32>, vector<128x4xf32>, vector<128x4xf32>, vector<128x4xf32>, vector<128x4xf32> -> vector<128x36xf32>
    %28 = arith.truncf %27 : vector<128x36xf32> to vector<128x36xbf16>
    %c0_41 = arith.constant 0 : index
    %c0_42 = arith.constant 0 : index
    %29 = vector.load %arg2[%c0_41, %c0_42] : memref<8x36xbf16, #tpu.memory_space<vmem>>, vector<8x36xbf16>
    %cst = arith.constant dense<0.000000e+00> : vector<8x128xf32>
    %30 = tpu.matmul %29, %28, %cst {dimension_numbers = #tpu.dot_dimension_numbers<[1], [1], [0], [0], [0, 0, 1, 0], [], []>} : vector<8x36xbf16>, vector<128x36xbf16>, vector<8x128xf32> -> vector<8x128xf32>
    %c0_43 = arith.constant 0 : index
    %c0_44 = arith.constant 0 : index
    %31 = vector.load %arg3[%c0_43, %c0_44] : memref<8x1xf32, #tpu.memory_space<vmem>>, vector<8x1xf32>
    %32 = vector.broadcast %31 : vector<8x1xf32> to vector<8x128xf32>
    %33 = arith.addf %30, %32 : vector<8x128xf32>
    %34 = tpu.iota {dimensions = array<i32: 1>} : vector<8x128xi32>
    %c7_i32 = arith.constant 7 : i32
    %35 = vector.broadcast %c7_i32 : i32 to vector<8x128xi32>
    %36 = arith.andi %34, %35 : vector<8x128xi32>
    %c3_i32 = arith.constant 3 : i32
    %37 = vector.broadcast %c3_i32 : i32 to vector<8x128xi32>
    %38 = arith.shrsi %34, %37 : vector<8x128xi32>
    %c7_i32_45 = arith.constant 7 : i32
    %39 = vector.broadcast %c7_i32_45 : i32 to vector<8x128xi32>
    %40 = arith.andi %38, %39 : vector<8x128xi32>
    %c0_i32 = arith.constant 0 : i32
    %41 = vector.broadcast %c0_i32 : i32 to vector<8x128xi32>
    %42 = arith.addi %40, %41 : vector<8x128xi32>
    %c1_i32 = arith.constant 1 : i32
    %43 = vector.broadcast %c1_i32 : i32 to vector<8x128xi32>
    %44 = arith.cmpi sge, %42, %43 : vector<8x128xi32>
    %c0_i32_46 = arith.constant 0 : i32
    %45 = vector.broadcast %c0_i32_46 : i32 to vector<8x128xi32>
    %46 = arith.addi %40, %45 : vector<8x128xi32>
    %c8_i32 = arith.constant 8 : i32
    %47 = vector.broadcast %c8_i32 : i32 to vector<8x128xi32>
    %48 = arith.cmpi sle, %46, %47 : vector<8x128xi32>
    %49 = arith.andi %44, %48 : vector<8x128xi1>
    %c0_i32_47 = arith.constant 0 : i32
    %50 = vector.broadcast %c0_i32_47 : i32 to vector<8x128xi32>
    %51 = arith.addi %36, %50 : vector<8x128xi32>
    %c1_i32_48 = arith.constant 1 : i32
    %52 = vector.broadcast %c1_i32_48 : i32 to vector<8x128xi32>
    %53 = arith.cmpi sge, %51, %52 : vector<8x128xi32>
    %54 = arith.andi %49, %53 : vector<8x128xi1>
    %c0_i32_49 = arith.constant 0 : i32
    %55 = vector.broadcast %c0_i32_49 : i32 to vector<8x128xi32>
    %56 = arith.addi %36, %55 : vector<8x128xi32>
    %c8_i32_50 = arith.constant 8 : i32
    %57 = vector.broadcast %c8_i32_50 : i32 to vector<8x128xi32>
    %58 = arith.cmpi sle, %56, %57 : vector<8x128xi32>
    %59 = arith.andi %54, %58 : vector<8x128xi1>
    %c0_i32_51 = arith.constant 0 : i32
    %60 = vector.broadcast %c0_i32_51 : i32 to vector<8x128xi32>
    %61 = arith.addi %40, %60 : vector<8x128xi32>
    %c1_i32_52 = arith.constant 1 : i32
    %62 = vector.broadcast %c1_i32_52 : i32 to vector<8x128xi32>
    %63 = arith.cmpi sge, %61, %62 : vector<8x128xi32>
    %c0_i32_53 = arith.constant 0 : i32
    %64 = vector.broadcast %c0_i32_53 : i32 to vector<8x128xi32>
    %65 = arith.addi %40, %64 : vector<8x128xi32>
    %c8_i32_54 = arith.constant 8 : i32
    %66 = vector.broadcast %c8_i32_54 : i32 to vector<8x128xi32>
    %67 = arith.cmpi sle, %65, %66 : vector<8x128xi32>
    %68 = arith.andi %63, %67 : vector<8x128xi1>
    %c1_i32_55 = arith.constant 1 : i32
    %69 = vector.broadcast %c1_i32_55 : i32 to vector<8x128xi32>
    %70 = arith.addi %36, %69 : vector<8x128xi32>
    %c1_i32_56 = arith.constant 1 : i32
    %71 = vector.broadcast %c1_i32_56 : i32 to vector<8x128xi32>
    %72 = arith.cmpi sge, %70, %71 : vector<8x128xi32>
    %73 = arith.andi %68, %72 : vector<8x128xi1>
    %c1_i32_57 = arith.constant 1 : i32
    %74 = vector.broadcast %c1_i32_57 : i32 to vector<8x128xi32>
    %75 = arith.addi %36, %74 : vector<8x128xi32>
    %c8_i32_58 = arith.constant 8 : i32
    %76 = vector.broadcast %c8_i32_58 : i32 to vector<8x128xi32>
    %77 = arith.cmpi sle, %75, %76 : vector<8x128xi32>
    %78 = arith.andi %73, %77 : vector<8x128xi1>
    %c0_i32_59 = arith.constant 0 : i32
    %79 = vector.broadcast %c0_i32_59 : i32 to vector<8x128xi32>
    %80 = arith.addi %40, %79 : vector<8x128xi32>
    %c1_i32_60 = arith.constant 1 : i32
    %81 = vector.broadcast %c1_i32_60 : i32 to vector<8x128xi32>
    %82 = arith.cmpi sge, %80, %81 : vector<8x128xi32>
    %c0_i32_61 = arith.constant 0 : i32
    %83 = vector.broadcast %c0_i32_61 : i32 to vector<8x128xi32>
    %84 = arith.addi %40, %83 : vector<8x128xi32>
    %c8_i32_62 = arith.constant 8 : i32
    %85 = vector.broadcast %c8_i32_62 : i32 to vector<8x128xi32>
    %86 = arith.cmpi sle, %84, %85 : vector<8x128xi32>
    %87 = arith.andi %82, %86 : vector<8x128xi1>
    %c2_i32 = arith.constant 2 : i32
    %88 = vector.broadcast %c2_i32 : i32 to vector<8x128xi32>
    %89 = arith.addi %36, %88 : vector<8x128xi32>
    %c1_i32_63 = arith.constant 1 : i32
    %90 = vector.broadcast %c1_i32_63 : i32 to vector<8x128xi32>
    %91 = arith.cmpi sge, %89, %90 : vector<8x128xi32>
    %92 = arith.andi %87, %91 : vector<8x128xi1>
    %c2_i32_64 = arith.constant 2 : i32
    %93 = vector.broadcast %c2_i32_64 : i32 to vector<8x128xi32>
    %94 = arith.addi %36, %93 : vector<8x128xi32>
    %c8_i32_65 = arith.constant 8 : i32
    %95 = vector.broadcast %c8_i32_65 : i32 to vector<8x128xi32>
    %96 = arith.cmpi sle, %94, %95 : vector<8x128xi32>
    %97 = arith.andi %92, %96 : vector<8x128xi1>
    %c1_i32_66 = arith.constant 1 : i32
    %98 = vector.broadcast %c1_i32_66 : i32 to vector<8x128xi32>
    %99 = arith.addi %40, %98 : vector<8x128xi32>
    %c1_i32_67 = arith.constant 1 : i32
    %100 = vector.broadcast %c1_i32_67 : i32 to vector<8x128xi32>
    %101 = arith.cmpi sge, %99, %100 : vector<8x128xi32>
    %c1_i32_68 = arith.constant 1 : i32
    %102 = vector.broadcast %c1_i32_68 : i32 to vector<8x128xi32>
    %103 = arith.addi %40, %102 : vector<8x128xi32>
    %c8_i32_69 = arith.constant 8 : i32
    %104 = vector.broadcast %c8_i32_69 : i32 to vector<8x128xi32>
    %105 = arith.cmpi sle, %103, %104 : vector<8x128xi32>
    %106 = arith.andi %101, %105 : vector<8x128xi1>
    %c0_i32_70 = arith.constant 0 : i32
    %107 = vector.broadcast %c0_i32_70 : i32 to vector<8x128xi32>
    %108 = arith.addi %36, %107 : vector<8x128xi32>
    %c1_i32_71 = arith.constant 1 : i32
    %109 = vector.broadcast %c1_i32_71 : i32 to vector<8x128xi32>
    %110 = arith.cmpi sge, %108, %109 : vector<8x128xi32>
    %111 = arith.andi %106, %110 : vector<8x128xi1>
    %c0_i32_72 = arith.constant 0 : i32
    %112 = vector.broadcast %c0_i32_72 : i32 to vector<8x128xi32>
    %113 = arith.addi %36, %112 : vector<8x128xi32>
    %c8_i32_73 = arith.constant 8 : i32
    %114 = vector.broadcast %c8_i32_73 : i32 to vector<8x128xi32>
    %115 = arith.cmpi sle, %113, %114 : vector<8x128xi32>
    %116 = arith.andi %111, %115 : vector<8x128xi1>
    %c1_i32_74 = arith.constant 1 : i32
    %117 = vector.broadcast %c1_i32_74 : i32 to vector<8x128xi32>
    %118 = arith.addi %40, %117 : vector<8x128xi32>
    %c1_i32_75 = arith.constant 1 : i32
    %119 = vector.broadcast %c1_i32_75 : i32 to vector<8x128xi32>
    %120 = arith.cmpi sge, %118, %119 : vector<8x128xi32>
    %c1_i32_76 = arith.constant 1 : i32
    %121 = vector.broadcast %c1_i32_76 : i32 to vector<8x128xi32>
    %122 = arith.addi %40, %121 : vector<8x128xi32>
    %c8_i32_77 = arith.constant 8 : i32
    %123 = vector.broadcast %c8_i32_77 : i32 to vector<8x128xi32>
    %124 = arith.cmpi sle, %122, %123 : vector<8x128xi32>
    %125 = arith.andi %120, %124 : vector<8x128xi1>
    %c1_i32_78 = arith.constant 1 : i32
    %126 = vector.broadcast %c1_i32_78 : i32 to vector<8x128xi32>
    %127 = arith.addi %36, %126 : vector<8x128xi32>
    %c1_i32_79 = arith.constant 1 : i32
    %128 = vector.broadcast %c1_i32_79 : i32 to vector<8x128xi32>
    %129 = arith.cmpi sge, %127, %128 : vector<8x128xi32>
    %130 = arith.andi %125, %129 : vector<8x128xi1>
    %c1_i32_80 = arith.constant 1 : i32
    %131 = vector.broadcast %c1_i32_80 : i32 to vector<8x128xi32>
    %132 = arith.addi %36, %131 : vector<8x128xi32>
    %c8_i32_81 = arith.constant 8 : i32
    %133 = vector.broadcast %c8_i32_81 : i32 to vector<8x128xi32>
    %134 = arith.cmpi sle, %132, %133 : vector<8x128xi32>
    %135 = arith.andi %130, %134 : vector<8x128xi1>
    %c1_i32_82 = arith.constant 1 : i32
    %136 = vector.broadcast %c1_i32_82 : i32 to vector<8x128xi32>
    %137 = arith.addi %40, %136 : vector<8x128xi32>
    %c1_i32_83 = arith.constant 1 : i32
    %138 = vector.broadcast %c1_i32_83 : i32 to vector<8x128xi32>
    %139 = arith.cmpi sge, %137, %138 : vector<8x128xi32>
    %c1_i32_84 = arith.constant 1 : i32
    %140 = vector.broadcast %c1_i32_84 : i32 to vector<8x128xi32>
    %141 = arith.addi %40, %140 : vector<8x128xi32>
    %c8_i32_85 = arith.constant 8 : i32
    %142 = vector.broadcast %c8_i32_85 : i32 to vector<8x128xi32>
    %143 = arith.cmpi sle, %141, %142 : vector<8x128xi32>
    %144 = arith.andi %139, %143 : vector<8x128xi1>
    %c2_i32_86 = arith.constant 2 : i32
    %145 = vector.broadcast %c2_i32_86 : i32 to vector<8x128xi32>
    %146 = arith.addi %36, %145 : vector<8x128xi32>
    %c1_i32_87 = arith.constant 1 : i32
    %147 = vector.broadcast %c1_i32_87 : i32 to vector<8x128xi32>
    %148 = arith.cmpi sge, %146, %147 : vector<8x128xi32>
    %149 = arith.andi %144, %148 : vector<8x128xi1>
    %c2_i32_88 = arith.constant 2 : i32
    %150 = vector.broadcast %c2_i32_88 : i32 to vector<8x128xi32>
    %151 = arith.addi %36, %150 : vector<8x128xi32>
    %c8_i32_89 = arith.constant 8 : i32
    %152 = vector.broadcast %c8_i32_89 : i32 to vector<8x128xi32>
    %153 = arith.cmpi sle, %151, %152 : vector<8x128xi32>
    %154 = arith.andi %149, %153 : vector<8x128xi1>
    %c2_i32_90 = arith.constant 2 : i32
    %155 = vector.broadcast %c2_i32_90 : i32 to vector<8x128xi32>
    %156 = arith.addi %40, %155 : vector<8x128xi32>
    %c1_i32_91 = arith.constant 1 : i32
    %157 = vector.broadcast %c1_i32_91 : i32 to vector<8x128xi32>
    %158 = arith.cmpi sge, %156, %157 : vector<8x128xi32>
    %c2_i32_92 = arith.constant 2 : i32
    %159 = vector.broadcast %c2_i32_92 : i32 to vector<8x128xi32>
    %160 = arith.addi %40, %159 : vector<8x128xi32>
    %c8_i32_93 = arith.constant 8 : i32
    %161 = vector.broadcast %c8_i32_93 : i32 to vector<8x128xi32>
    %162 = arith.cmpi sle, %160, %161 : vector<8x128xi32>
    %163 = arith.andi %158, %162 : vector<8x128xi1>
    %c0_i32_94 = arith.constant 0 : i32
    %164 = vector.broadcast %c0_i32_94 : i32 to vector<8x128xi32>
    %165 = arith.addi %36, %164 : vector<8x128xi32>
    %c1_i32_95 = arith.constant 1 : i32
    %166 = vector.broadcast %c1_i32_95 : i32 to vector<8x128xi32>
    %167 = arith.cmpi sge, %165, %166 : vector<8x128xi32>
    %168 = arith.andi %163, %167 : vector<8x128xi1>
    %c0_i32_96 = arith.constant 0 : i32
    %169 = vector.broadcast %c0_i32_96 : i32 to vector<8x128xi32>
    %170 = arith.addi %36, %169 : vector<8x128xi32>
    %c8_i32_97 = arith.constant 8 : i32
    %171 = vector.broadcast %c8_i32_97 : i32 to vector<8x128xi32>
    %172 = arith.cmpi sle, %170, %171 : vector<8x128xi32>
    %173 = arith.andi %168, %172 : vector<8x128xi1>
    %c2_i32_98 = arith.constant 2 : i32
    %174 = vector.broadcast %c2_i32_98 : i32 to vector<8x128xi32>
    %175 = arith.addi %40, %174 : vector<8x128xi32>
    %c1_i32_99 = arith.constant 1 : i32
    %176 = vector.broadcast %c1_i32_99 : i32 to vector<8x128xi32>
    %177 = arith.cmpi sge, %175, %176 : vector<8x128xi32>
    %c2_i32_100 = arith.constant 2 : i32
    %178 = vector.broadcast %c2_i32_100 : i32 to vector<8x128xi32>
    %179 = arith.addi %40, %178 : vector<8x128xi32>
    %c8_i32_101 = arith.constant 8 : i32
    %180 = vector.broadcast %c8_i32_101 : i32 to vector<8x128xi32>
    %181 = arith.cmpi sle, %179, %180 : vector<8x128xi32>
    %182 = arith.andi %177, %181 : vector<8x128xi1>
    %c1_i32_102 = arith.constant 1 : i32
    %183 = vector.broadcast %c1_i32_102 : i32 to vector<8x128xi32>
    %184 = arith.addi %36, %183 : vector<8x128xi32>
    %c1_i32_103 = arith.constant 1 : i32
    %185 = vector.broadcast %c1_i32_103 : i32 to vector<8x128xi32>
    %186 = arith.cmpi sge, %184, %185 : vector<8x128xi32>
    %187 = arith.andi %182, %186 : vector<8x128xi1>
    %c1_i32_104 = arith.constant 1 : i32
    %188 = vector.broadcast %c1_i32_104 : i32 to vector<8x128xi32>
    %189 = arith.addi %36, %188 : vector<8x128xi32>
    %c8_i32_105 = arith.constant 8 : i32
    %190 = vector.broadcast %c8_i32_105 : i32 to vector<8x128xi32>
    %191 = arith.cmpi sle, %189, %190 : vector<8x128xi32>
    %192 = arith.andi %187, %191 : vector<8x128xi1>
    %c2_i32_106 = arith.constant 2 : i32
    %193 = vector.broadcast %c2_i32_106 : i32 to vector<8x128xi32>
    %194 = arith.addi %40, %193 : vector<8x128xi32>
    %c1_i32_107 = arith.constant 1 : i32
    %195 = vector.broadcast %c1_i32_107 : i32 to vector<8x128xi32>
    %196 = arith.cmpi sge, %194, %195 : vector<8x128xi32>
    %c2_i32_108 = arith.constant 2 : i32
    %197 = vector.broadcast %c2_i32_108 : i32 to vector<8x128xi32>
    %198 = arith.addi %40, %197 : vector<8x128xi32>
    %c8_i32_109 = arith.constant 8 : i32
    %199 = vector.broadcast %c8_i32_109 : i32 to vector<8x128xi32>
    %200 = arith.cmpi sle, %198, %199 : vector<8x128xi32>
    %201 = arith.andi %196, %200 : vector<8x128xi1>
    %c2_i32_110 = arith.constant 2 : i32
    %202 = vector.broadcast %c2_i32_110 : i32 to vector<8x128xi32>
    %203 = arith.addi %36, %202 : vector<8x128xi32>
    %c1_i32_111 = arith.constant 1 : i32
    %204 = vector.broadcast %c1_i32_111 : i32 to vector<8x128xi32>
    %205 = arith.cmpi sge, %203, %204 : vector<8x128xi32>
    %206 = arith.andi %201, %205 : vector<8x128xi1>
    %c2_i32_112 = arith.constant 2 : i32
    %207 = vector.broadcast %c2_i32_112 : i32 to vector<8x128xi32>
    %208 = arith.addi %36, %207 : vector<8x128xi32>
    %c8_i32_113 = arith.constant 8 : i32
    %209 = vector.broadcast %c8_i32_113 : i32 to vector<8x128xi32>
    %210 = arith.cmpi sle, %208, %209 : vector<8x128xi32>
    %211 = arith.andi %206, %210 : vector<8x128xi1>
    %cst_114 = arith.constant 0.000000e+00 : f32
    %212 = vector.broadcast %cst_114 : f32 to vector<8x9xf32>
    %213 = vector.extract_strided_slice %33 {offsets = [0, 0], sizes = [8, 119], strides = [1, 1]} : vector<8x128xf32> to vector<8x119xf32>
    %214 = tpu.concatenate %212, %213 in 1 : vector<8x9xf32>, vector<8x119xf32> -> vector<8x128xf32>
    %cst_115 = arith.constant 0.000000e+00 : f32
    %215 = vector.broadcast %cst_115 : f32 to vector<8x128xf32>
    %216 = arith.select %59, %214, %215 : vector<8x128xi1>, vector<8x128xf32>
    %cst_116 = arith.constant 0.000000e+00 : f32
    %217 = vector.broadcast %cst_116 : f32 to vector<8x8xf32>
    %218 = vector.extract_strided_slice %33 {offsets = [0, 0], sizes = [8, 120], strides = [1, 1]} : vector<8x128xf32> to vector<8x120xf32>
    %219 = tpu.concatenate %217, %218 in 1 : vector<8x8xf32>, vector<8x120xf32> -> vector<8x128xf32>
    %cst_117 = arith.constant 0.000000e+00 : f32
    %220 = vector.broadcast %cst_117 : f32 to vector<8x128xf32>
    %221 = arith.select %78, %219, %220 : vector<8x128xi1>, vector<8x128xf32>
    %cst_118 = arith.constant 0.000000e+00 : f32
    %222 = vector.broadcast %cst_118 : f32 to vector<8x7xf32>
    %223 = vector.extract_strided_slice %33 {offsets = [0, 0], sizes = [8, 121], strides = [1, 1]} : vector<8x128xf32> to vector<8x121xf32>
    %224 = tpu.concatenate %222, %223 in 1 : vector<8x7xf32>, vector<8x121xf32> -> vector<8x128xf32>
    %cst_119 = arith.constant 0.000000e+00 : f32
    %225 = vector.broadcast %cst_119 : f32 to vector<8x128xf32>
    %226 = arith.select %97, %224, %225 : vector<8x128xi1>, vector<8x128xf32>
    %cst_120 = arith.constant 0.000000e+00 : f32
    %227 = vector.broadcast %cst_120 : f32 to vector<8x1xf32>
    %228 = vector.extract_strided_slice %33 {offsets = [0, 0], sizes = [8, 127], strides = [1, 1]} : vector<8x128xf32> to vector<8x127xf32>
    %229 = tpu.concatenate %227, %228 in 1 : vector<8x1xf32>, vector<8x127xf32> -> vector<8x128xf32>
    %cst_121 = arith.constant 0.000000e+00 : f32
    %230 = vector.broadcast %cst_121 : f32 to vector<8x128xf32>
    %231 = arith.select %116, %229, %230 : vector<8x128xi1>, vector<8x128xf32>
    %cst_122 = arith.constant 0.000000e+00 : f32
    %232 = vector.broadcast %cst_122 : f32 to vector<8x128xf32>
    %233 = arith.select %135, %33, %232 : vector<8x128xi1>, vector<8x128xf32>
    %234 = vector.extract_strided_slice %33 {offsets = [0, 1], sizes = [8, 127], strides = [1, 1]} : vector<8x128xf32> to vector<8x127xf32>
    %cst_123 = arith.constant 0.000000e+00 : f32
    %235 = vector.broadcast %cst_123 : f32 to vector<8x1xf32>
    %236 = tpu.concatenate %234, %235 in 1 : vector<8x127xf32>, vector<8x1xf32> -> vector<8x128xf32>
    %cst_124 = arith.constant 0.000000e+00 : f32
    %237 = vector.broadcast %cst_124 : f32 to vector<8x128xf32>
    %238 = arith.select %154, %236, %237 : vector<8x128xi1>, vector<8x128xf32>
    %239 = vector.extract_strided_slice %33 {offsets = [0, 7], sizes = [8, 121], strides = [1, 1]} : vector<8x128xf32> to vector<8x121xf32>
    %cst_125 = arith.constant 0.000000e+00 : f32
    %240 = vector.broadcast %cst_125 : f32 to vector<8x7xf32>
    %241 = tpu.concatenate %239, %240 in 1 : vector<8x121xf32>, vector<8x7xf32> -> vector<8x128xf32>
    %cst_126 = arith.constant 0.000000e+00 : f32
    %242 = vector.broadcast %cst_126 : f32 to vector<8x128xf32>
    %243 = arith.select %173, %241, %242 : vector<8x128xi1>, vector<8x128xf32>
    %244 = vector.extract_strided_slice %33 {offsets = [0, 8], sizes = [8, 120], strides = [1, 1]} : vector<8x128xf32> to vector<8x120xf32>
    %cst_127 = arith.constant 0.000000e+00 : f32
    %245 = vector.broadcast %cst_127 : f32 to vector<8x8xf32>
    %246 = tpu.concatenate %244, %245 in 1 : vector<8x120xf32>, vector<8x8xf32> -> vector<8x128xf32>
    %cst_128 = arith.constant 0.000000e+00 : f32
    %247 = vector.broadcast %cst_128 : f32 to vector<8x128xf32>
    %248 = arith.select %192, %246, %247 : vector<8x128xi1>, vector<8x128xf32>
    %249 = vector.extract_strided_slice %33 {offsets = [0, 9], sizes = [8, 119], strides = [1, 1]} : vector<8x128xf32> to vector<8x119xf32>
    %cst_129 = arith.constant 0.000000e+00 : f32
    %250 = vector.broadcast %cst_129 : f32 to vector<8x9xf32>
    %251 = tpu.concatenate %249, %250 in 1 : vector<8x119xf32>, vector<8x9xf32> -> vector<8x128xf32>
    %cst_130 = arith.constant 0.000000e+00 : f32
    %252 = vector.broadcast %cst_130 : f32 to vector<8x128xf32>
    %253 = arith.select %211, %251, %252 : vector<8x128xi1>, vector<8x128xf32>
    %254 = tpu.concatenate %216, %221, %226, %231, %233, %238, %243, %248, %253 in 0 : vector<8x128xf32>, vector<8x128xf32>, vector<8x128xf32>, vector<8x128xf32>, vector<8x128xf32>, vector<8x128xf32>, vector<8x128xf32>, vector<8x128xf32>, vector<8x128xf32> -> vector<72x128xf32>
    %255 = arith.truncf %254 : vector<72x128xf32> to vector<72x128xbf16>
    %c0_131 = arith.constant 0 : index
    %c0_132 = arith.constant 0 : index
    %256 = vector.load %arg4[%c0_131, %c0_132] : memref<8x72xbf16, #tpu.memory_space<vmem>>, vector<8x72xbf16>
    %cst_133 = arith.constant dense<0.000000e+00> : vector<8x128xf32>
    %257 = tpu.matmul %256, %255, %cst_133 {dimension_numbers = #tpu.dot_dimension_numbers<[1], [0], [0], [1], [0, 0, 1, 1], [], []>} : vector<8x72xbf16>, vector<72x128xbf16>, vector<8x128xf32> -> vector<8x128xf32>
    %258 = vector.extract_strided_slice %257 {offsets = [0, 0], sizes = [8, 64], strides = [1, 1]} : vector<8x128xf32> to vector<8x64xf32>
    %259 = vector.shape_cast %258 : vector<8x64xf32> to vector<1x8x64xf32>
    %cst_134 = arith.constant dense<0.000000e+00> : vector<1xf32>
    %260 = vector.multi_reduction <add>, %259, %cst_134 [1, 2] : vector<1x8x64xf32> to vector<1xf32>
    %261 = vector.shape_cast %260 : vector<1xf32> to vector<1x1x1xf32>
    %262 = vector.extract %261[0, 0, 0] : f32 from vector<1x1x1xf32>
    %cst_135 = arith.constant 5.120000e+02 : f32
    %263 = arith.divf %262, %cst_135 : f32
    %264 = arith.mulf %258, %258 : vector<8x64xf32>
    %265 = vector.shape_cast %264 : vector<8x64xf32> to vector<1x8x64xf32>
    %cst_136 = arith.constant dense<0.000000e+00> : vector<1xf32>
    %266 = vector.multi_reduction <add>, %265, %cst_136 [1, 2] : vector<1x8x64xf32> to vector<1xf32>
    %267 = vector.shape_cast %266 : vector<1xf32> to vector<1x1x1xf32>
    %268 = vector.extract %267[0, 0, 0] : f32 from vector<1x1x1xf32>
    %cst_137 = arith.constant 5.120000e+02 : f32
    %269 = arith.divf %268, %cst_137 : f32
    %270 = arith.mulf %263, %263 : f32
    %271 = arith.subf %269, %270 : f32
    %272 = vector.broadcast %263 : f32 to vector<8x64xf32>
    %273 = arith.subf %258, %272 : vector<8x64xf32>
    %cst_138 = arith.constant 9.99999974E-6 : f32
    %274 = arith.addf %271, %cst_138 : f32
    %275 = math.rsqrt %274 : f32
    %276 = vector.broadcast %275 : f32 to vector<8x64xf32>
    %277 = arith.mulf %273, %276 : vector<8x64xf32>
    %c0_139 = arith.constant 0 : index
    %c0_140 = arith.constant 0 : index
    %278 = vector.load %arg5[%c0_139, %c0_140] : memref<8x1xf32, #tpu.memory_space<vmem>>, vector<8x1xf32>
    %279 = vector.broadcast %278 : vector<8x1xf32> to vector<8x64xf32>
    %280 = arith.mulf %277, %279 : vector<8x64xf32>
    %c0_141 = arith.constant 0 : index
    %c0_142 = arith.constant 0 : index
    %281 = vector.load %arg6[%c0_141, %c0_142] : memref<8x1xf32, #tpu.memory_space<vmem>>, vector<8x1xf32>
    %282 = vector.broadcast %281 : vector<8x1xf32> to vector<8x64xf32>
    %283 = arith.addf %280, %282 : vector<8x64xf32>
    %cst_143 = arith.constant 0.000000e+00 : f32
    %284 = vector.broadcast %cst_143 : f32 to vector<8x64xf32>
    %285 = arith.maximumf %283, %284 : vector<8x64xf32>
    %286 = vector.extract_strided_slice %257 {offsets = [0, 64], sizes = [8, 64], strides = [1, 1]} : vector<8x128xf32> to vector<8x64xf32>
    %287 = vector.shape_cast %286 : vector<8x64xf32> to vector<1x8x64xf32>
    %cst_144 = arith.constant dense<0.000000e+00> : vector<1xf32>
    %288 = vector.multi_reduction <add>, %287, %cst_144 [1, 2] : vector<1x8x64xf32> to vector<1xf32>
    %289 = vector.shape_cast %288 : vector<1xf32> to vector<1x1x1xf32>
    %290 = vector.extract %289[0, 0, 0] : f32 from vector<1x1x1xf32>
    %cst_145 = arith.constant 5.120000e+02 : f32
    %291 = arith.divf %290, %cst_145 : f32
    %292 = arith.mulf %286, %286 : vector<8x64xf32>
    %293 = vector.shape_cast %292 : vector<8x64xf32> to vector<1x8x64xf32>
    %cst_146 = arith.constant dense<0.000000e+00> : vector<1xf32>
    %294 = vector.multi_reduction <add>, %293, %cst_146 [1, 2] : vector<1x8x64xf32> to vector<1xf32>
    %295 = vector.shape_cast %294 : vector<1xf32> to vector<1x1x1xf32>
    %296 = vector.extract %295[0, 0, 0] : f32 from vector<1x1x1xf32>
    %cst_147 = arith.constant 5.120000e+02 : f32
    %297 = arith.divf %296, %cst_147 : f32
    %298 = arith.mulf %291, %291 : f32
    %299 = arith.subf %297, %298 : f32
    %300 = vector.broadcast %291 : f32 to vector<8x64xf32>
    %301 = arith.subf %286, %300 : vector<8x64xf32>
    %cst_148 = arith.constant 9.99999974E-6 : f32
    %302 = arith.addf %299, %cst_148 : f32
    %303 = math.rsqrt %302 : f32
    %304 = vector.broadcast %303 : f32 to vector<8x64xf32>
    %305 = arith.mulf %301, %304 : vector<8x64xf32>
    %c0_149 = arith.constant 0 : index
    %c0_150 = arith.constant 0 : index
    %306 = vector.load %arg5[%c0_149, %c0_150] : memref<8x1xf32, #tpu.memory_space<vmem>>, vector<8x1xf32>
    %307 = vector.broadcast %306 : vector<8x1xf32> to vector<8x64xf32>
    %308 = arith.mulf %305, %307 : vector<8x64xf32>
    %c0_151 = arith.constant 0 : index
    %c0_152 = arith.constant 0 : index
    %309 = vector.load %arg6[%c0_151, %c0_152] : memref<8x1xf32, #tpu.memory_space<vmem>>, vector<8x1xf32>
    %310 = vector.broadcast %309 : vector<8x1xf32> to vector<8x64xf32>
    %311 = arith.addf %308, %310 : vector<8x64xf32>
    %cst_153 = arith.constant 0.000000e+00 : f32
    %312 = vector.broadcast %cst_153 : f32 to vector<8x64xf32>
    %313 = arith.maximumf %311, %312 : vector<8x64xf32>
    %314 = tpu.concatenate %285, %313 in 1 : vector<8x64xf32>, vector<8x64xf32> -> vector<8x128xf32>
    %cst_154 = arith.constant 0.000000e+00 : f32
    %315 = vector.broadcast %cst_154 : f32 to vector<8x9xf32>
    %316 = vector.extract_strided_slice %314 {offsets = [0, 0], sizes = [8, 119], strides = [1, 1]} : vector<8x128xf32> to vector<8x119xf32>
    %317 = tpu.concatenate %315, %316 in 1 : vector<8x9xf32>, vector<8x119xf32> -> vector<8x128xf32>
    %cst_155 = arith.constant 0.000000e+00 : f32
    %318 = vector.broadcast %cst_155 : f32 to vector<8x128xf32>
    %319 = arith.select %59, %317, %318 : vector<8x128xi1>, vector<8x128xf32>
    %cst_156 = arith.constant 0.000000e+00 : f32
    %320 = vector.broadcast %cst_156 : f32 to vector<8x8xf32>
    %321 = vector.extract_strided_slice %314 {offsets = [0, 0], sizes = [8, 120], strides = [1, 1]} : vector<8x128xf32> to vector<8x120xf32>
    %322 = tpu.concatenate %320, %321 in 1 : vector<8x8xf32>, vector<8x120xf32> -> vector<8x128xf32>
    %cst_157 = arith.constant 0.000000e+00 : f32
    %323 = vector.broadcast %cst_157 : f32 to vector<8x128xf32>
    %324 = arith.select %78, %322, %323 : vector<8x128xi1>, vector<8x128xf32>
    %cst_158 = arith.constant 0.000000e+00 : f32
    %325 = vector.broadcast %cst_158 : f32 to vector<8x7xf32>
    %326 = vector.extract_strided_slice %314 {offsets = [0, 0], sizes = [8, 121], strides = [1, 1]} : vector<8x128xf32> to vector<8x121xf32>
    %327 = tpu.concatenate %325, %326 in 1 : vector<8x7xf32>, vector<8x121xf32> -> vector<8x128xf32>
    %cst_159 = arith.constant 0.000000e+00 : f32
    %328 = vector.broadcast %cst_159 : f32 to vector<8x128xf32>
    %329 = arith.select %97, %327, %328 : vector<8x128xi1>, vector<8x128xf32>
    %cst_160 = arith.constant 0.000000e+00 : f32
    %330 = vector.broadcast %cst_160 : f32 to vector<8x1xf32>
    %331 = vector.extract_strided_slice %314 {offsets = [0, 0], sizes = [8, 127], strides = [1, 1]} : vector<8x128xf32> to vector<8x127xf32>
    %332 = tpu.concatenate %330, %331 in 1 : vector<8x1xf32>, vector<8x127xf32> -> vector<8x128xf32>
    %cst_161 = arith.constant 0.000000e+00 : f32
    %333 = vector.broadcast %cst_161 : f32 to vector<8x128xf32>
    %334 = arith.select %116, %332, %333 : vector<8x128xi1>, vector<8x128xf32>
    %cst_162 = arith.constant 0.000000e+00 : f32
    %335 = vector.broadcast %cst_162 : f32 to vector<8x128xf32>
    %336 = arith.select %135, %314, %335 : vector<8x128xi1>, vector<8x128xf32>
    %337 = vector.extract_strided_slice %314 {offsets = [0, 1], sizes = [8, 127], strides = [1, 1]} : vector<8x128xf32> to vector<8x127xf32>
    %cst_163 = arith.constant 0.000000e+00 : f32
    %338 = vector.broadcast %cst_163 : f32 to vector<8x1xf32>
    %339 = tpu.concatenate %337, %338 in 1 : vector<8x127xf32>, vector<8x1xf32> -> vector<8x128xf32>
    %cst_164 = arith.constant 0.000000e+00 : f32
    %340 = vector.broadcast %cst_164 : f32 to vector<8x128xf32>
    %341 = arith.select %154, %339, %340 : vector<8x128xi1>, vector<8x128xf32>
    %342 = vector.extract_strided_slice %314 {offsets = [0, 7], sizes = [8, 121], strides = [1, 1]} : vector<8x128xf32> to vector<8x121xf32>
    %cst_165 = arith.constant 0.000000e+00 : f32
    %343 = vector.broadcast %cst_165 : f32 to vector<8x7xf32>
    %344 = tpu.concatenate %342, %343 in 1 : vector<8x121xf32>, vector<8x7xf32> -> vector<8x128xf32>
    %cst_166 = arith.constant 0.000000e+00 : f32
    %345 = vector.broadcast %cst_166 : f32 to vector<8x128xf32>
    %346 = arith.select %173, %344, %345 : vector<8x128xi1>, vector<8x128xf32>
    %347 = vector.extract_strided_slice %314 {offsets = [0, 8], sizes = [8, 120], strides = [1, 1]} : vector<8x128xf32> to vector<8x120xf32>
    %cst_167 = arith.constant 0.000000e+00 : f32
    %348 = vector.broadcast %cst_167 : f32 to vector<8x8xf32>
    %349 = tpu.concatenate %347, %348 in 1 : vector<8x120xf32>, vector<8x8xf32> -> vector<8x128xf32>
    %cst_168 = arith.constant 0.000000e+00 : f32
    %350 = vector.broadcast %cst_168 : f32 to vector<8x128xf32>
    %351 = arith.select %192, %349, %350 : vector<8x128xi1>, vector<8x128xf32>
    %352 = vector.extract_strided_slice %314 {offsets = [0, 9], sizes = [8, 119], strides = [1, 1]} : vector<8x128xf32> to vector<8x119xf32>
    %cst_169 = arith.constant 0.000000e+00 : f32
    %353 = vector.broadcast %cst_169 : f32 to vector<8x9xf32>
    %354 = tpu.concatenate %352, %353 in 1 : vector<8x119xf32>, vector<8x9xf32> -> vector<8x128xf32>
    %cst_170 = arith.constant 0.000000e+00 : f32
    %355 = vector.broadcast %cst_170 : f32 to vector<8x128xf32>
    %356 = arith.select %211, %354, %355 : vector<8x128xi1>, vector<8x128xf32>
    %357 = tpu.concatenate %319, %324, %329, %334, %336, %341, %346, %351, %356 in 0 : vector<8x128xf32>, vector<8x128xf32>, vector<8x128xf32>, vector<8x128xf32>, vector<8x128xf32>, vector<8x128xf32>, vector<8x128xf32>, vector<8x128xf32>, vector<8x128xf32> -> vector<72x128xf32>
    %358 = arith.truncf %357 : vector<72x128xf32> to vector<72x128xbf16>
    %c0_171 = arith.constant 0 : index
    %c0_172 = arith.constant 0 : index
    %359 = vector.load %arg7[%c0_171, %c0_172] : memref<8x72xbf16, #tpu.memory_space<vmem>>, vector<8x72xbf16>
    %cst_173 = arith.constant dense<0.000000e+00> : vector<8x128xf32>
    %360 = tpu.matmul %359, %358, %cst_173 {dimension_numbers = #tpu.dot_dimension_numbers<[1], [0], [0], [1], [0, 0, 1, 1], [], []>} : vector<8x72xbf16>, vector<72x128xbf16>, vector<8x128xf32> -> vector<8x128xf32>
    %361 = vector.extract_strided_slice %360 {offsets = [0, 0], sizes = [8, 64], strides = [1, 1]} : vector<8x128xf32> to vector<8x64xf32>
    %362 = vector.shape_cast %361 : vector<8x64xf32> to vector<1x8x64xf32>
    %cst_174 = arith.constant dense<0.000000e+00> : vector<1xf32>
    %363 = vector.multi_reduction <add>, %362, %cst_174 [1, 2] : vector<1x8x64xf32> to vector<1xf32>
    %364 = vector.shape_cast %363 : vector<1xf32> to vector<1x1x1xf32>
    %365 = vector.extract %364[0, 0, 0] : f32 from vector<1x1x1xf32>
    %cst_175 = arith.constant 5.120000e+02 : f32
    %366 = arith.divf %365, %cst_175 : f32
    %367 = arith.mulf %361, %361 : vector<8x64xf32>
    %368 = vector.shape_cast %367 : vector<8x64xf32> to vector<1x8x64xf32>
    %cst_176 = arith.constant dense<0.000000e+00> : vector<1xf32>
    %369 = vector.multi_reduction <add>, %368, %cst_176 [1, 2] : vector<1x8x64xf32> to vector<1xf32>
    %370 = vector.shape_cast %369 : vector<1xf32> to vector<1x1x1xf32>
    %371 = vector.extract %370[0, 0, 0] : f32 from vector<1x1x1xf32>
    %cst_177 = arith.constant 5.120000e+02 : f32
    %372 = arith.divf %371, %cst_177 : f32
    %373 = arith.mulf %366, %366 : f32
    %374 = arith.subf %372, %373 : f32
    %375 = vector.broadcast %366 : f32 to vector<8x64xf32>
    %376 = arith.subf %361, %375 : vector<8x64xf32>
    %cst_178 = arith.constant 9.99999974E-6 : f32
    %377 = arith.addf %374, %cst_178 : f32
    %378 = math.rsqrt %377 : f32
    %379 = vector.broadcast %378 : f32 to vector<8x64xf32>
    %380 = arith.mulf %376, %379 : vector<8x64xf32>
    %c0_179 = arith.constant 0 : index
    %c0_180 = arith.constant 0 : index
    %381 = vector.load %arg8[%c0_179, %c0_180] : memref<8x1xf32, #tpu.memory_space<vmem>>, vector<8x1xf32>
    %382 = vector.broadcast %381 : vector<8x1xf32> to vector<8x64xf32>
    %383 = arith.mulf %380, %382 : vector<8x64xf32>
    %c0_181 = arith.constant 0 : index
    %c0_182 = arith.constant 0 : index
    %384 = vector.load %arg9[%c0_181, %c0_182] : memref<8x1xf32, #tpu.memory_space<vmem>>, vector<8x1xf32>
    %385 = vector.broadcast %384 : vector<8x1xf32> to vector<8x64xf32>
    %386 = arith.addf %383, %385 : vector<8x64xf32>
    %cst_183 = arith.constant 0.000000e+00 : f32
    %387 = vector.broadcast %cst_183 : f32 to vector<8x64xf32>
    %388 = arith.maximumf %386, %387 : vector<8x64xf32>
    %389 = vector.extract_strided_slice %360 {offsets = [0, 64], sizes = [8, 64], strides = [1, 1]} : vector<8x128xf32> to vector<8x64xf32>
    %390 = vector.shape_cast %389 : vector<8x64xf32> to vector<1x8x64xf32>
    %cst_184 = arith.constant dense<0.000000e+00> : vector<1xf32>
    %391 = vector.multi_reduction <add>, %390, %cst_184 [1, 2] : vector<1x8x64xf32> to vector<1xf32>
    %392 = vector.shape_cast %391 : vector<1xf32> to vector<1x1x1xf32>
    %393 = vector.extract %392[0, 0, 0] : f32 from vector<1x1x1xf32>
    %cst_185 = arith.constant 5.120000e+02 : f32
    %394 = arith.divf %393, %cst_185 : f32
    %395 = arith.mulf %389, %389 : vector<8x64xf32>
    %396 = vector.shape_cast %395 : vector<8x64xf32> to vector<1x8x64xf32>
    %cst_186 = arith.constant dense<0.000000e+00> : vector<1xf32>
    %397 = vector.multi_reduction <add>, %396, %cst_186 [1, 2] : vector<1x8x64xf32> to vector<1xf32>
    %398 = vector.shape_cast %397 : vector<1xf32> to vector<1x1x1xf32>
    %399 = vector.extract %398[0, 0, 0] : f32 from vector<1x1x1xf32>
    %cst_187 = arith.constant 5.120000e+02 : f32
    %400 = arith.divf %399, %cst_187 : f32
    %401 = arith.mulf %394, %394 : f32
    %402 = arith.subf %400, %401 : f32
    %403 = vector.broadcast %394 : f32 to vector<8x64xf32>
    %404 = arith.subf %389, %403 : vector<8x64xf32>
    %cst_188 = arith.constant 9.99999974E-6 : f32
    %405 = arith.addf %402, %cst_188 : f32
    %406 = math.rsqrt %405 : f32
    %407 = vector.broadcast %406 : f32 to vector<8x64xf32>
    %408 = arith.mulf %404, %407 : vector<8x64xf32>
    %c0_189 = arith.constant 0 : index
    %c0_190 = arith.constant 0 : index
    %409 = vector.load %arg8[%c0_189, %c0_190] : memref<8x1xf32, #tpu.memory_space<vmem>>, vector<8x1xf32>
    %410 = vector.broadcast %409 : vector<8x1xf32> to vector<8x64xf32>
    %411 = arith.mulf %408, %410 : vector<8x64xf32>
    %c0_191 = arith.constant 0 : index
    %c0_192 = arith.constant 0 : index
    %412 = vector.load %arg9[%c0_191, %c0_192] : memref<8x1xf32, #tpu.memory_space<vmem>>, vector<8x1xf32>
    %413 = vector.broadcast %412 : vector<8x1xf32> to vector<8x64xf32>
    %414 = arith.addf %411, %413 : vector<8x64xf32>
    %cst_193 = arith.constant 0.000000e+00 : f32
    %415 = vector.broadcast %cst_193 : f32 to vector<8x64xf32>
    %416 = arith.maximumf %414, %415 : vector<8x64xf32>
    %417 = tpu.concatenate %388, %416 in 1 : vector<8x64xf32>, vector<8x64xf32> -> vector<8x128xf32>
    %c0_194 = arith.constant 0 : index
    %c0_195 = arith.constant 0 : index
    %418 = vector.load %arg10[%c0_194, %c0_195] : memref<8x8xbf16, #tpu.memory_space<vmem>>, vector<8x8xbf16>
    %419 = arith.truncf %33 : vector<8x128xf32> to vector<8x128xbf16>
    %cst_196 = arith.constant dense<0.000000e+00> : vector<8x128xf32>
    %420 = tpu.matmul %418, %419, %cst_196 {dimension_numbers = #tpu.dot_dimension_numbers<[1], [0], [0], [1], [0, 0, 1, 1], [], []>} : vector<8x8xbf16>, vector<8x128xbf16>, vector<8x128xf32> -> vector<8x128xf32>
    %c0_197 = arith.constant 0 : index
    %c0_198 = arith.constant 0 : index
    %421 = vector.load %arg11[%c0_197, %c0_198] : memref<8x1xf32, #tpu.memory_space<vmem>>, vector<8x1xf32>
    %422 = vector.broadcast %421 : vector<8x1xf32> to vector<8x128xf32>
    %423 = arith.addf %420, %422 : vector<8x128xf32>
    %424 = arith.addf %417, %423 : vector<8x128xf32>
    %c0_199 = arith.constant 0 : index
    %c0_200 = arith.constant 0 : index
    %425 = vector.load %arg12[%c0_199, %c0_200] : memref<8x128xf32, #tpu.memory_space<vmem>>, vector<8x128xf32>
    tpu.vector_store %arg12[%c0_199, %c0_200], %424 {strides = array<i32>} : memref<8x128xf32, #tpu.memory_space<vmem>>, vector<8x128xf32>,
    return
  }
  func.func @transform_0(%arg0: i32) -> (i32, i32, i32, i32, i32) {
    %c0_i32 = arith.constant 0 : i32
    %c0_i32_0 = arith.constant 0 : i32
    %c0_i32_1 = arith.constant 0 : i32
    %c0_i32_2 = arith.constant 0 : i32
    %c0_i32_3 = arith.constant 0 : i32
    %c0_i32_4 = arith.constant 0 : i32
    return %c0_i32, %c0_i32_0, %c0_i32_1, %c0_i32_2, %c0_i32_3 : i32, i32, i32, i32, i32
  }
  func.func @transform_1(%arg0: i32) -> (i32, i32) {
    %c0_i32 = arith.constant 0 : i32
    %c0_i32_0 = arith.constant 0 : i32
    %c0_i32_1 = arith.constant 0 : i32
    return %c0_i32, %c0_i32_0 : i32, i32
  }
  func.func @transform_2(%arg0: i32) -> (i32, i32) {
    %c0_i32 = arith.constant 0 : i32
    %c0_i32_0 = arith.constant 0 : i32
    %c0_i32_1 = arith.constant 0 : i32
    return %c0_i32, %c0_i32_0 : i32, i32
  }
  func.func @transform_3(%arg0: i32) -> (i32, i32) {
    %c0_i32 = arith.constant 0 : i32
    %c0_i32_0 = arith.constant 0 : i32
    %c0_i32_1 = arith.constant 0 : i32
    return %c0_i32, %c0_i32_0 : i32, i32
  }
  func.func @transform_4(%arg0: i32) -> (i32, i32) {
    %c0_i32 = arith.constant 0 : i32
    %c0_i32_0 = arith.constant 0 : i32
    %c0_i32_1 = arith.constant 0 : i32
    return %c0_i32, %c0_i32_0 : i32, i32
  }
  func.func @transform_5(%arg0: i32) -> (i32, i32) {
    %c0_i32 = arith.constant 0 : i32
    %c0_i32_0 = arith.constant 0 : i32
    %c0_i32_1 = arith.constant 0 : i32
    return %c0_i32, %c0_i32_0 : i32, i32
  }
  func.func @transform_6(%arg0: i32) -> (i32, i32) {
    %c0_i32 = arith.constant 0 : i32
    %c0_i32_0 = arith.constant 0 : i32
    %c0_i32_1 = arith.constant 0 : i32
    return %c0_i32, %c0_i32_0 : i32, i32
  }
  func.func @transform_7(%arg0: i32) -> (i32, i32) {
    %c0_i32 = arith.constant 0 : i32
    %c0_i32_0 = arith.constant 0 : i32
    %c0_i32_1 = arith.constant 0 : i32
    return %c0_i32, %c0_i32_0 : i32, i32
  }
  func.func @transform_8(%arg0: i32) -> (i32, i32) {
    %c0_i32 = arith.constant 0 : i32
    %c0_i32_0 = arith.constant 0 : i32
    %c0_i32_1 = arith.constant 0 : i32
    return %c0_i32, %c0_i32_0 : i32, i32
  }
  func.func @transform_9(%arg0: i32) -> (i32, i32) {
    %c0_i32 = arith.constant 0 : i32
    %c0_i32_0 = arith.constant 0 : i32
    %c0_i32_1 = arith.constant 0 : i32
    return %c0_i32, %c0_i32_0 : i32, i32
  }
  func.func @transform_10(%arg0: i32) -> (i32, i32) {
    %c0_i32 = arith.constant 0 : i32
    %c0_i32_0 = arith.constant 0 : i32
    %c0_i32_1 = arith.constant 0 : i32
    return %c0_i32, %c0_i32_0 : i32, i32
  }
  func.func @transform_11(%arg0: i32) -> (i32, i32) {
    %c0_i32 = arith.constant 0 : i32
    %c0_i32_0 = arith.constant 0 : i32
    %c0_i32_1 = arith.constant 0 : i32
    return %c0_i32, %c0_i32_0 : i32, i32
  }
}

</mosaic_0001>

<bundles_post_ra>
// kernel: tpu_custom_call.1
= control target key start
LH: loop header
LB: loop body
LE: loop exit
PB: predicated region body
PF: predicated region fallthrough
CT: control target
= control target key end

     0   :  { %s2045_s14 = smov 4   ;;  %s2046_s15 = smov 12   ;;  %v2049_v19 = vmov 0.0   ;;  %s2940_s0 = inlined_call_operand.vmem [shape: f32[2,4,9,9,4], index: 0, kind: input, shape index: {}]   ;;  %s2941_s1 = inlined_call_operand.vmem [shape: bf16[8,36], index: 1, kind: input, shape index: {}]   ;;  %s2942_s2 = inlined_call_operand.vmem [shape: f32[8,1], index: 2, kind: input, shape index: {}]   ;;  %s2943_s3 = inlined_call_operand.vmem [shape: bf16[8,72], index: 3, kind: input, shape index: {}]   ;;  %s2944_s4 = inlined_call_operand.vmem [shape: f32[8,1], index: 4, kind: input, shape index: {}]   ;;  %s2945_s5 = inlined_call_operand.vmem [shape: f32[8,1], index: 5, kind: input, shape index: {}]   ;;  %s2946_s6 = inlined_call_operand.vmem [shape: bf16[8,72], index: 6, kind: input, shape index: {}]   ;;  %s2947_s7 = inlined_call_operand.vmem [shape: f32[8,1], index: 7, kind: input, shape index: {}]   ;;  %s2948_s8 = inlined_call_operand.vmem [shape: f32[8,1], index: 8, kind: input, shape index: {}]   ;;  %s2949_s9 = inlined_call_operand.vmem [shape: bf16[8,8], index: 9, kind: input, shape index: {}]   ;;  %s2950_s10 = inlined_call_operand.vmem [shape: f32[8,1], index: 10, kind: input, shape index: {}]   ;;  %s2951_s11 = inlined_call_operand.hbm [shape: f32[8,128], index: 11, kind: output, shape index: {}]  }
   0x1   :  { %v1430_v0 = vld [vmem:[%s2940_s0 + $0x90] sm:$0xff]  ;;  %v1431_v1 = vld [vmem:[%s2940_s0 + $0xa0] sm:$0xff]  ;;  %s2047_s24 = smov 8   ;;  %s2048_s25 = smov 16   ;;  %1593 = vmatprep.subr.bf16.mxu0 %v2049_v19  ;;  %1613 = vmatprep.subr.bf16.mxu1 %v2049_v19 }
   0x2   :  { %v1446_v2 = vld [vmem:[%s2940_s0 + $0x120] sm:$0xff]  ;;  %v1691_v3 = vpack.i.bf16 %v1431_v1, %v1430_v0  ;;  %v1447_v4 = vld [vmem:[%s2940_s0 + $0x130] sm:$0xff]  ;;  %s2050_s30 = smov 20   ;;  %s2051_s12 = smov 24  }
   0x3   :  { %v73_v5 = vld [vmem:[%s2940_s0 + $0x1] sm:$0xff]  ;;  %v74_v6 = vld [vmem:[%s2940_s0 + $0x11] sm:$0xff]  ;;  %v1701_v7 = vpack.i.bf16 %v1447_v4, %v1446_v2  ;;  %s2052_s19 = smov 28   ;;  %s2053_s20 = smov 32  }
   0x4   :  { %v1462_v8 = vld [vmem:[%s2940_s0 + $0x1b0] sm:$0xff]  ;;  %v1463_v9 = vld [vmem:[%s2940_s0 + $0x1c0] sm:$0xff]  ;;  %1692 = vrot.lane.b32.xlu0 %v1691_v3, %s2045_s14  ;;  %v1696_v10 = vpack.i.bf16 %v74_v6, %v73_v5 }
   0x5   :  { %1702 = vrot.lane.b32.xlu1 %v1701_v7, %s2046_s15  ;;  %v1706_v11 = vpack.i.bf16 %v1463_v9, %v1462_v8  ;;  %v1478_v12 = vld [vmem:[%s2940_s0 + $0x121] sm:$0xff]  ;;  %v1479_v13 = vld [vmem:[%s2940_s0 + $0x131] sm:$0xff] }
   0x6   :  { %v2160_v14 = vld [vmem:[%s2940_s0 + $0x10] sm:$0xff]  ;;  %v2165_v15 = vld [vmem:[%s2940_s0 + $0x20] sm:$0xff]  ;;  %v1711_v16 = vpack.i.bf16 %v1479_v13, %v1478_v12 }
   0x7   :  { %v1716_v17 = vpack.i.bf16 %v2165_v15, %v2160_v14  ;;  %v1511_v18 = vld [vmem:[%s2940_s0 + $0xb0] sm:$0xff]  ;;  %v1527_v20 = vld [vmem:[%s2940_s0 + $0x21] sm:$0xff] }
   0x8   :  { %1697 = vrot.lane.b32.xlu0 %v1696_v10, %s2047_s24  ;;  %v1721_v21 = vpack.i.bf16 %v1511_v18, %v1431_v1  ;;  %v1726_v22 = vpack.i.bf16 %v1527_v20, %v74_v6  ;;  %v1433_v23 = vld [vmem:[%s2940_s0 + $0xc0] sm:$0xff]  ;;  %v76_v24 = vld [vmem:[%s2940_s0 + $0x31] sm:$0xff] }
   0x9   :  { %1707 = vrot.lane.b32.xlu1 %v1706_v11, %s2048_s25  ;;  %v1731_v25 = vpack.i.bf16 %v1433_v23, %v1511_v18  ;;  %v1736_v26 = vpack.i.bf16 %v76_v24, %v1527_v20  ;;  %v1448_v27 = vld [vmem:[%s2940_s0 + $0x140] sm:$0xff]  ;;  %v1449_v28 = vld [vmem:[%s2940_s0 + $0x150] sm:$0xff] }
   0xa   :  { %v1464_v29 = vld [vmem:[%s2940_s0 + $0x1d0] sm:$0xff]  ;;  %v1465_v30 = vld [vmem:[%s2940_s0 + $0x1e0] sm:$0xff]  ;;  %v1741_v31 = vpack.i.bf16 %v1449_v28, %v1448_v27 }
   0xb   :  { %v1746_v32 = vpack.i.bf16 %v1465_v30, %v1464_v29  ;;  %v1480_v33 = vld [vmem:[%s2940_s0 + $0x141] sm:$0xff]  ;;  %v1481_v34 = vld [vmem:[%s2940_s0 + $0x151] sm:$0xff] }
   0xc   :  { %1712 = vrot.lane.b32.xlu0 %v1711_v16, %s2050_s30  ;;  %v2212_v35 = vld [vmem:[%s2940_s0 + $0x30] sm:$0xff]  ;;  %v2217_v36 = vld [vmem:[%s2940_s0 + $0x40] sm:$0xff]  ;;  %v1751_v37 = vpack.i.bf16 %v1481_v34, %v1480_v33 }
   0xd   :  { %1717 = vrot.lane.b32.xlu1 %v1716_v17, %s2051_s12  ;;  %v1756_v38 = vpack.i.bf16 %v2217_v36, %v2212_v35  ;;  %v1513_v39 = vld [vmem:[%s2940_s0 + $0xd0] sm:$0xff]  ;;  %v1529_v40 = vld [vmem:[%s2940_s0 + $0x41] sm:$0xff] }
   0xe   :  { %v1761_v41 = vpack.i.bf16 %v1513_v39, %v1433_v23  ;;  %v1766_v42 = vpack.i.bf16 %v1529_v40, %v76_v24  ;;  %v1435_v43 = vld [vmem:[%s2940_s0 + $0xe0] sm:$0xff]  ;;  %v78_v44 = vld [vmem:[%s2940_s0 + $0x51] sm:$0xff] }
   0xf   :  { %v1771_v45 = vpack.i.bf16 %v1435_v43, %v1513_v39  ;;  %v1776_v46 = vpack.i.bf16 %v78_v44, %v1529_v40  ;;  %v1450_v47 = vld [vmem:[%s2940_s0 + $0x160] sm:$0xff]  ;;  %v1451_v48 = vld [vmem:[%s2940_s0 + $0x170] sm:$0xff] }
  0x10   :  { %1722 = vrot.lane.b32.xlu0 %v1721_v21, %s2052_s19  ;;  %v1466_v49 = vld [vmem:[%s2940_s0 + $0x1f0] sm:$0xff]  ;;  %v1467_v50 = vld [vmem:[%s2940_s0 + $0x200] sm:$0xff] }
  0x11   :  { %1727 = vrot.lane.b32.xlu1 %v1726_v22, %s2053_s20 }
  0x14   :  { %1732 = vrot.lane.b32.xlu0 %v1731_v25, %s2045_s14 }
  0x15   :  { %1737 = vrot.lane.b32.xlu1 %v1736_v26, %s2047_s24 }
  0x18   :  { %1742 = vrot.lane.b32.xlu0 %v1741_v31, %s2046_s15 }
  0x19   :  { %1747 = vrot.lane.b32.xlu1 %v1746_v32, %s2048_s25 }
  0x1c   :  { %1752 = vrot.lane.b32.xlu0 %v1751_v37, %s2050_s30 }
  0x1d   :  { %1757 = vrot.lane.b32.xlu1 %v1756_v38, %s2051_s12 }
  0x20   :  { %1762 = vrot.lane.b32.xlu0 %v1761_v41, %s2052_s19 }
  0x21   :  { %1767 = vrot.lane.b32.xlu1 %v1766_v42, %s2053_s20 }
  0x22   :  { %16 = vsyncpa [#allocation3], 0  ;;  %v1781_v51 = vpack.i.bf16 %v1451_v48, %v1450_v47  ;;  %v1786_v52 = vpack.i.bf16 %v1467_v50, %v1466_v49  ;;  %v1482_v53 = vld [vmem:[%s2940_s0 + $0x161] sm:$0xff]  ;;  %v1483_v54 = vld [vmem:[%s2940_s0 + $0x171] sm:$0xff]  ;;  %vm701_vm0 = vcmask 31744   ;;  %vm2957_vm1 = vcmask 64512  }
  0x23   :  { %v2262_v55 = vld [vmem:[%s2940_s0 + $0x50] sm:$0xff]  ;;  %v2267_v56 = vld [vmem:[%s2940_s0 + $0x60] sm:$0xff]  ;;  %v1791_v57 = vpack.i.bf16 %v1483_v54, %v1482_v53  ;;  %vm735_vm2 = vcmask 97280   ;;  %vm752_vm3 = vcmask 130048   ;;  %vm2956_vm4 = vmmov 0   ;;  %s2058_s27 = smov 127  }
  0x24   :  { %1772 = vrot.lane.b32.xlu0 %v1771_v45, %s2045_s14  ;;  %v1796_v58 = vpack.i.bf16 %v2267_v56, %v2262_v55  ;;  %v1515_v59 = vld [vmem:[%s2940_s0 + $0xf0] sm:$0xff]  ;;  %v1531_v60 = vld [vmem:[%s2940_s0 + $0x61] sm:$0xff]  ;;  %1609 = vmatprep.mubr.msk.bf16.mxu0 %vm2956_vm4, %v2049_v19  ;;  %vm769_vm5 = vcmask 162816   ;;  %vm786_vm6 = vcmask 195584   ;;  %vm803_vm7 = vcmask 228352   ;;  %s2060_s28 = smov 1  }
  0x25   :  { %1777 = vrot.lane.b32.xlu1 %v1776_v46, %s2047_s24  ;;  %v1801_v61 = vpack.i.bf16 %v1515_v59, %v1435_v43  ;;  %v1806_v62 = vpack.i.bf16 %v1531_v60, %v78_v44  ;;  %v1437_v63 = vld [vmem:[%s2940_s0 + $0x100] sm:$0xff]  ;;  %v80_v0 = vld [vmem:[%s2940_s0 + $0x71] sm:$0xff]  ;;  %1623 = vmatprep.mubr.msk.bf16.mxu1 %vm2956_vm4, %v2049_v19  ;;  %vm820_vm8 = vcmask 261120   ;;  %vm852_vm9 = vcmask 293888   ;;  %s2061_s29 = smov 121   ;;  %s2062_s13 = smov 119  }
  0x26   :  { %v1811_v1 = vpack.i.bf16 %v1437_v63, %v1515_v59  ;;  %v1816_v2 = vpack.i.bf16 %v80_v0, %v1531_v60  ;;  %v1452_v3 = vld [vmem:[%s2940_s0 + $0x180] sm:$0xff]  ;;  %v1453_v4 = vld [vmem:[%s2940_s0 + $0x190] sm:$0xff] }
  0x27   :  { %v1468_v5 = vld [vmem:[%s2940_s0 + $0x210] sm:$0xff]  ;;  %v1469_v6 = vld [vmem:[%s2940_s0 + $0x220] sm:$0xff]  ;;  %v1821_v7 = vpack.i.bf16 %v1453_v4, %v1452_v3 }
  0x28   :  { %1782 = vrot.lane.b32.xlu0 %v1781_v51, %s2046_s15  ;;  %v1826_v8 = vpack.i.bf16 %v1469_v6, %v1468_v5  ;;  %v1484_v9 = vld [vmem:[%s2940_s0 + $0x181] sm:$0xff]  ;;  %v1485_v10 = vld [vmem:[%s2940_s0 + $0x191] sm:$0xff] }
  0x29   :  { %1787 = vrot.lane.b32.xlu1 %v1786_v52, %s2048_s25  ;;  %v2312_v11 = vld [vmem:[%s2940_s0 + $0x70] sm:$0xff]  ;;  %v1501_v12 = vld [vmem:[%s2940_s0 + $0x80] sm:$0xff]  ;;  %v1831_v13 = vpack.i.bf16 %v1485_v10, %v1484_v9 }
  0x2a   :  { %v1836_v16 = vpack.i.bf16 %v1501_v12, %v2312_v11  ;;  %v1517_v17 = vld [vmem:[%s2940_s0 + $0x110] sm:$0xff]  ;;  %v1533_v18 = vld [vmem:[%s2940_s0 + $0x81] sm:$0xff] }
  0x2b   :  { %v1841_v20 = vpack.i.bf16 %v1517_v17, %v1437_v63  ;;  %v1846_v21 = vpack.i.bf16 %v1533_v18, %v80_v0  ;;  %v1438_v22 = vld [vmem:[%s2940_s0 + $0x2d0] sm:$0xff]  ;;  %v1439_v23 = vld [vmem:[%s2940_s0 + $0x2e0] sm:$0xff] }
  0x2c   :  { %1792 = vrot.lane.b32.xlu0 %v1791_v57, %s2050_s30  ;;  %v81_v24 = vld [vmem:[%s2940_s0 + $0x241] sm:$0xff]  ;;  %v82_v25 = vld [vmem:[%s2940_s0 + $0x251] sm:$0xff]  ;;  %v1851_v26 = vpack.i.bf16 %v1439_v23, %v1438_v22 }
  0x2d   :  { %1797 = vrot.lane.b32.xlu1 %v1796_v58, %s2051_s12  ;;  %v1856_v27 = vpack.i.bf16 %v82_v25, %v81_v24  ;;  %v1454_v28 = vld [vmem:[%s2940_s0 + $0x360] sm:$0xff]  ;;  %v1455_v29 = vld [vmem:[%s2940_s0 + $0x370] sm:$0xff] }
  0x2e   :  { %v1470_v30 = vld [vmem:[%s2940_s0 + $0x3f0] sm:$0xff]  ;;  %v1471_v31 = vld [vmem:[%s2940_s0 + $0x400] sm:$0xff]  ;;  %v1861_v32 = vpack.i.bf16 %v1455_v29, %v1454_v28 }
  0x2f   :  { %v1866_v33 = vpack.i.bf16 %v1471_v31, %v1470_v30  ;;  %v1486_v34 = vld [vmem:[%s2940_s0 + $0x361] sm:$0xff]  ;;  %v1487_v37 = vld [vmem:[%s2940_s0 + $0x371] sm:$0xff] }
  0x30   :  { %1802 = vrot.lane.b32.xlu0 %v1801_v61, %s2052_s19  ;;  %v2365_v38 = vld [vmem:[%s2940_s0 + $0x250] sm:$0xff]  ;;  %v2370_v39 = vld [vmem:[%s2940_s0 + $0x260] sm:$0xff]  ;;  %v1871_v40 = vpack.i.bf16 %v1487_v37, %v1486_v34 }
  0x31   :  { %1807 = vrot.lane.b32.xlu1 %v1806_v62, %s2053_s20  ;;  %v1876_v41 = vpack.i.bf16 %v2370_v39, %v2365_v38  ;;  %v1519_v42 = vld [vmem:[%s2940_s0 + $0x2f0] sm:$0xff]  ;;  %v1535_v43 = vld [vmem:[%s2940_s0 + $0x261] sm:$0xff] }
  0x32   :  { %v1881_v44 = vpack.i.bf16 %v1519_v42, %v1439_v23  ;;  %v1886_v45 = vpack.i.bf16 %v1535_v43, %v82_v25  ;;  %v1441_v46 = vld [vmem:[%s2940_s0 + $0x300] sm:$0xff]  ;;  %v84_v47 = vld [vmem:[%s2940_s0 + $0x271] sm:$0xff] }
  0x33   :  { %v1891_v48 = vpack.i.bf16 %v1441_v46, %v1519_v42  ;;  %v1896_v49 = vpack.i.bf16 %v84_v47, %v1535_v43  ;;  %v1456_v50 = vld [vmem:[%s2940_s0 + $0x380] sm:$0xff]  ;;  %v1457_v51 = vld [vmem:[%s2940_s0 + $0x390] sm:$0xff] }
  0x34   :  { %1812 = vrot.lane.b32.xlu0 %v1811_v1, %s2045_s14  ;;  %v1472_v52 = vld [vmem:[%s2940_s0 + $0x410] sm:$0xff]  ;;  %v1473_v53 = vld [vmem:[%s2940_s0 + $0x420] sm:$0xff]  ;;  %v1901_v54 = vpack.i.bf16 %v1457_v51, %v1456_v50 }
  0x35   :  { %1817 = vrot.lane.b32.xlu1 %v1816_v2, %s2047_s24  ;;  %v1906_v57 = vpack.i.bf16 %v1473_v53, %v1472_v52  ;;  %v1488_v58 = vld [vmem:[%s2940_s0 + $0x381] sm:$0xff]  ;;  %v1489_v59 = vld [vmem:[%s2940_s0 + $0x391] sm:$0xff] }
  0x36   :  { %v2415_v60 = vld [vmem:[%s2940_s0 + $0x270] sm:$0xff]  ;;  %v2420_v61 = vld [vmem:[%s2940_s0 + $0x280] sm:$0xff]  ;;  %v1911_v62 = vpack.i.bf16 %v1489_v59, %v1488_v58 }
  0x37   :  { %v1916_v63 = vpack.i.bf16 %v2420_v61, %v2415_v60  ;;  %v1521_v0 = vld [vmem:[%s2940_s0 + $0x310] sm:$0xff]  ;;  %v1537_v1 = vld [vmem:[%s2940_s0 + $0x281] sm:$0xff] }
  0x38   :  { %1822 = vrot.lane.b32.xlu0 %v1821_v7, %s2046_s15  ;;  %v1921_v2 = vpack.i.bf16 %v1521_v0, %v1441_v46  ;;  %v1926_v3 = vpack.i.bf16 %v1537_v1, %v84_v47  ;;  %v1443_v4 = vld [vmem:[%s2940_s0 + $0x320] sm:$0xff]  ;;  %v86_v5 = vld [vmem:[%s2940_s0 + $0x291] sm:$0xff] }
  0x39   :  { %1827 = vrot.lane.b32.xlu1 %v1826_v8, %s2048_s25  ;;  %v1931_v6 = vpack.i.bf16 %v1443_v4, %v1521_v0  ;;  %v1936_v7 = vpack.i.bf16 %v86_v5, %v1537_v1  ;;  %v1458_v8 = vld [vmem:[%s2940_s0 + $0x3a0] sm:$0xff]  ;;  %v1459_v9 = vld [vmem:[%s2940_s0 + $0x3b0] sm:$0xff] }
  0x3a   :  { %v1474_v10 = vld [vmem:[%s2940_s0 + $0x430] sm:$0xff]  ;;  %v1475_v12 = vld [vmem:[%s2940_s0 + $0x440] sm:$0xff] }
  0x3b   :  { %v1490_v17 = vld [vmem:[%s2940_s0 + $0x3a1] sm:$0xff]  ;;  %v1491_v18 = vld [vmem:[%s2940_s0 + $0x3b1] sm:$0xff] }
  0x3c   :  { %1832 = vrot.lane.b32.xlu0 %v1831_v13, %s2050_s30  ;;  %v1941_v13 = vpack.i.bf16 %v1459_v9, %v1458_v8  ;;  %v1951_v22 = vpack.i.bf16 %v1491_v18, %v1490_v17  ;;  %v1523_v24 = vld [vmem:[%s2940_s0 + $0x330] sm:$0xff]  ;;  %v1539_v25 = vld [vmem:[%s2940_s0 + $0x2a1] sm:$0xff] }
  0x3d   :  { %1837 = vrot.lane.b32.xlu1 %v1836_v16, %s2051_s12  ;;  %v1946_v16 = vpack.i.bf16 %v1475_v12, %v1474_v10  ;;  %v2487_v28 = vld [vmem:[%s2940_s0 + $0x340] sm:$0xff]  ;;  %v2492_v29 = vld [vmem:[%s2940_s0 + $0x2b1] sm:$0xff] }
  0x3e   :  { %v1971_v30 = vpack.i.bf16 %v2487_v28, %v1523_v24  ;;  %v1976_v31 = vpack.i.bf16 %v2492_v29, %v1539_v25  ;;  %v1476_v34 = vld [vmem:[%s2940_s0 + $0x450] sm:$0xff]  ;;  %v1477_v37 = vld [vmem:[%s2940_s0 + $0x460] sm:$0xff] }
  0x3f   :  { %v1492_v42 = vld [vmem:[%s2940_s0 + $0x3c1] sm:$0xff]  ;;  %v1493_v43 = vld [vmem:[%s2940_s0 + $0x3d1] sm:$0xff] }
  0x40   :  { %1842 = vrot.lane.b32.xlu0 %v1841_v20, %s2052_s19  ;;  %v2465_v20 = vld [vmem:[%s2940_s0 + $0x290] sm:$0xff]  ;;  %v1509_v46 = vld [vmem:[%s2940_s0 + $0x2c0] sm:$0xff]  ;;  %v1991_v51 = vpack.i.bf16 %v1493_v43, %v1492_v42 }
  0x41   :  { %1847 = vrot.lane.b32.xlu1 %v1846_v21, %s2053_s20  ;;  %v2470_v21 = vld [vmem:[%s2940_s0 + $0x2a0] sm:$0xff] }
  0x42   :  { %v1956_v23 = vpack.i.bf16 %v2470_v21, %v2465_v20  ;;  %v40_v52 = vld [vmem:[%s2940_s0] sm:$0xff] }
  0x43   :  { %v1541_v58 = vld [vmem:[%s2940_s0 + $0x2c1] sm:$0xff] }
  0x44   :  { %1852 = vrot.lane.b32.xlu0 %v1851_v26, %s2045_s14  ;;  %v1961_v26 = vpack.i.bf16 %v1523_v24, %v1443_v4  ;;  %v2006_v8 = vpack.i.bf16 %v1541_v58, %v2492_v29 }
  0x45   :  { %1857 = vrot.lane.b32.xlu1 %v1856_v27, %s2047_s24  ;;  %v1966_v27 = vpack.i.bf16 %v1539_v25, %v86_v5 }
  0x48   :  { %1862 = vrot.lane.b32.xlu0 %v1861_v32, %s2046_s15  ;;  %v1460_v32 = vld [vmem:[%s2940_s0 + $0x3c0] sm:$0xff] }
  0x49   :  { %1867 = vrot.lane.b32.xlu1 %v1866_v33, %s2048_s25  ;;  %v1461_v33 = vld [vmem:[%s2940_s0 + $0x3d0] sm:$0xff] }
  0x4c   :  { %1872 = vrot.lane.b32.xlu0 %v1871_v40, %s2050_s30  ;;  %v1981_v40 = vpack.i.bf16 %v1461_v33, %v1460_v32 }
  0x4d   :  { %1877 = vrot.lane.b32.xlu1 %v1876_v41, %s2051_s12  ;;  %v1986_v41 = vpack.i.bf16 %v1477_v37, %v1476_v34 }
  0x50   :  { %1882 = vrot.lane.b32.xlu0 %v1881_v44, %s2052_s19 }
  0x51   :  { %1887 = vrot.lane.b32.xlu1 %v1886_v45, %s2053_s20  ;;  %v2521_v45 = vld [vmem:[%s2940_s0 + $0x2b0] sm:$0xff] }
  0x52   :  { %v1996_v53 = vpack.i.bf16 %v1509_v46, %v2521_v45 }
  0x54   :  { %1892 = vrot.lane.b32.xlu0 %v1891_v48, %s2045_s14  ;;  %v1525_v48 = vld [vmem:[%s2940_s0 + $0x350] sm:$0xff] }
  0x55   :  { %1897 = vrot.lane.b32.xlu1 %v1896_v49, %s2047_s24 }
  0x58   :  { %1902 = vrot.lane.b32.xlu0 %v1901_v54, %s2046_s15 }
  0x59   :  { %1907 = vrot.lane.b32.xlu1 %v1906_v57, %s2048_s25  ;;  %v2001_v57 = vpack.i.bf16 %v1525_v48, %v2487_v28  ;;  %v2055_v28 = vmov 0  }
  0x5a   :  { %2011 = vset.pattern.permute.xlu0 %v2055_v28  ;;  %2012 = vset.pattern.permute.xlu1 %v2055_v28 }
  0x5c   :  { %1912 = vrot.lane.b32.xlu0 %v1911_v62, %s2050_s30 }
  0x5d   :  { %1917 = vrot.lane.b32.xlu1 %v1916_v63, %s2051_s12 }
  0x60   :  { %1922 = vrot.lane.b32.xlu0 %v1921_v2, %s2052_s19 }
  0x61   :  { %1927 = vrot.lane.b32.xlu1 %v1926_v3, %s2053_s20 }
  0x64   :  { %1932 = vrot.lane.b32.xlu0 %v1931_v6, %s2045_s14 }
  0x65   :  { %1937 = vrot.lane.b32.xlu1 %v1936_v7, %s2047_s24 }
  0x68   :  { %1942 = vrot.lane.b32.xlu0 %v1941_v13, %s2046_s15 }
  0x69   :  { %1947 = vrot.lane.b32.xlu1 %v1946_v16, %s2048_s25 }
  0x6c   :  { %1952 = vrot.lane.b32.xlu0 %v1951_v22, %s2050_s30 }
  0x6d   :  { %1957 = vrot.lane.b32.xlu1 %v1956_v23, %s2051_s12 }
  0x70   :  { %1962 = vrot.lane.b32.xlu0 %v1961_v26, %s2052_s19  ;;  %v846_v26 = vld [vmem:[%s2942_s2] sm:$0xff] }
  0x71   :  { %1967 = vrot.lane.b32.xlu1 %v1966_v27, %s2053_s20 }
  0x74   :  { %1972 = vrot.lane.b32.xlu0 %v1971_v30, %s2045_s14 }
  0x75   :  { %1977 = vrot.lane.b32.xlu1 %v1976_v31, %s2047_s24 }
  0x76   :  { %v1693_v44 = vpop.permute.xlu0 %1692 }
  0x77   :  { %v1703_v47 = vpop.permute.xlu1 %1702  ;;  %v1695_v49 = vunpack.i.h.bf16 %v1693_v44  ;;  %v1694_v50 = vunpack.i.l.bf16 %v1693_v44 }
  0x78   :  { %1982 = vrot.lane.b32.xlu0 %v1981_v40, %s2046_s15  ;;  %v1705_v59 = vunpack.i.h.bf16 %v1703_v47  ;;  %v1704_v62 = vunpack.i.l.bf16 %v1703_v47 }
  0x79   :  { %1987 = vrot.lane.b32.xlu1 %v1986_v41, %s2048_s25  ;;  %v702_v2 = vsel %vm701_vm0, %v40_v52, %v1694_v50  ;;  %v703_v3 = vsel %vm701_vm0, %v2160_v14, %v1695_v49 }
  0x7a   :  { %v1698_v54 = vpop.permute.xlu0 %1697 }
  0x7b   :  { %v1700_v63 = vunpack.i.h.bf16 %v1698_v54  ;;  %v1699_v0 = vunpack.i.l.bf16 %v1698_v54  ;;  %v1708_v1 = vpop.permute.xlu1 %1707 }
  0x7c   :  { %v1710_v4 = vunpack.i.h.bf16 %v1708_v1  ;;  %v1709_v5 = vunpack.i.l.bf16 %v1708_v1  ;;  %1992 = vrot.lane.b32.xlu0 %v1991_v51, %s2050_s30 }
  0x7d   :  { %v719_v6 = vsel %vm2957_vm1, %v702_v2, %v1699_v0  ;;  %v720_v7 = vsel %vm2957_vm1, %v703_v3, %v1700_v63  ;;  %1997 = vrot.lane.b32.xlu1 %v1996_v53, %s2051_s12 }
  0x7e   :  { %v736_v9 = vsel %vm735_vm2, %v719_v6, %v1704_v62  ;;  %v737_v10 = vsel %vm735_vm2, %v720_v7, %v1705_v59  ;;  %v1713_v12 = vpop.permute.xlu0 %1712 }
  0x7f   :  { %v753_v14 = vsel %vm752_vm3, %v736_v9, %v1709_v5  ;;  %v754_v13 = vsel %vm752_vm3, %v737_v10, %v1710_v4  ;;  %v1715_v16 = vunpack.i.h.bf16 %v1713_v12  ;;  %v1714_v17 = vunpack.i.l.bf16 %v1713_v12  ;;  %v1718_v18 = vpop.permute.xlu1 %1717 }
  0x80   :  { %v1720_v22 = vunpack.i.h.bf16 %v1718_v18  ;;  %v1719_v23 = vunpack.i.l.bf16 %v1718_v18  ;;  %2002 = vrot.lane.b32.xlu0 %v2001_v57, %s2052_s19  ;;  %s2056_s19 = smov 7  }
  0x81   :  { %v770_v24 = vsel %vm769_vm5, %v753_v14, %v1714_v17  ;;  %v771_v25 = vsel %vm769_vm5, %v754_v13, %v1715_v16  ;;  %2007 = vrot.lane.b32.xlu1 %v2006_v8, %s2053_s20  ;;  %s2057_s20 = smov 9  }
  0x82   :  { %v1723_v27 = vpop.permute.xlu0 %1722  ;;  %v787_v32 = vsel %vm786_vm6, %v770_v24, %v1719_v23  ;;  %v788_v33 = vsel %vm786_vm6, %v771_v25, %v1720_v22 }
  0x83   :  { %v1725_v29 = vunpack.i.h.bf16 %v1723_v27  ;;  %v1724_v30 = vunpack.i.l.bf16 %v1723_v27  ;;  %v1728_v31 = vpop.permute.xlu1 %1727 }
  0x84   :  { %v1730_v34 = vunpack.i.h.bf16 %v1728_v31  ;;  %v1729_v37 = vunpack.i.l.bf16 %v1728_v31  ;;  %849 = vperm.xlu0 %2011, %v846_v26  }
  0x85   :  { %v804_v40 = vsel %vm803_vm7, %v787_v32, %v1724_v30  ;;  %v805_v41 = vsel %vm803_vm7, %v788_v33, %v1725_v29 }
  0x86   :  { %v1733_v42 = vpop.permute.xlu0 %1732  ;;  %v821_v43 = vsel %vm820_vm8, %v804_v40, %v1729_v37  ;;  %v822_v44 = vsel %vm820_vm8, %v805_v41, %v1730_v34 }
  0x87   :  { %v1735_v46 = vunpack.i.h.bf16 %v1733_v42  ;;  %v1734_v47 = vunpack.i.l.bf16 %v1733_v42  ;;  %v1738_v48 = vpop.permute.xlu1 %1737  ;;  %v837_v49 = vpack.c.bf16 %v822_v44, %v821_v43 }
  0x88   :  { %v1740_v50 = vunpack.i.h.bf16 %v1738_v48  ;;  %v1739_v51 = vunpack.i.l.bf16 %v1738_v48 }
  0x89   :  { %v704_v52 = vsel %vm701_vm0, %v2165_v15, %v1734_v47  ;;  %v705_v53 = vsel %vm701_vm0, %v2212_v35, %v1735_v46  ;;  %v857_v54 = vsel %vm852_vm9, %v837_v49, 0 }
  0x8a   :  { %v1743_v57 = vpop.permute.xlu0 %1742  ;;  %1594 = vmatpush3.bf16.xpose.msra.mxu0 %v857_v54  ;;  %v721_v63 = vsel %vm2957_vm1, %v704_v52, %v1739_v51  ;;  %v722_v0 = vsel %vm2957_vm1, %v705_v53, %v1740_v50 }
  0x8b   :  { %v1745_v58 = vunpack.i.h.bf16 %v1743_v57  ;;  %v1744_v59 = vunpack.i.l.bf16 %v1743_v57  ;;  %v1748_v62 = vpop.permute.xlu1 %1747  ;;  %1595 = vmatprep.subr.bf16.mxu0 %v2049_v19 }
  0x8c   :  { %v1750_v1 = vunpack.i.h.bf16 %v1748_v62  ;;  %v1749_v2 = vunpack.i.l.bf16 %v1748_v62 }
  0x8d   :  { %v738_v15 = vsel %vm735_vm2, %v721_v63, %v1744_v59  ;;  %v739_v3 = vsel %vm735_vm2, %v722_v0, %v1745_v58 }
  0x8e   :  { %v1753_v35 = vpop.permute.xlu0 %1752  ;;  %v755_v7 = vsel %vm752_vm3, %v738_v15, %v1749_v2  ;;  %v756_v8 = vsel %vm752_vm3, %v739_v3, %v1750_v1 }
  0x8f   :  { %v1755_v4 = vunpack.i.h.bf16 %v1753_v35  ;;  %v1754_v5 = vunpack.i.l.bf16 %v1753_v35  ;;  %v1758_v6 = vpop.permute.xlu1 %1757 }
  0x90   :  { %v1760_v9 = vunpack.i.h.bf16 %v1758_v6  ;;  %v1759_v10 = vunpack.i.l.bf16 %v1758_v6 }
  0x91   :  { %v772_v12 = vsel %vm769_vm5, %v755_v7, %v1754_v5  ;;  %v773_v14 = vsel %vm769_vm5, %v756_v8, %v1755_v4 }
  0x92   :  { %v1763_v13 = vpop.permute.xlu0 %1762  ;;  %v789_v22 = vsel %vm786_vm6, %v772_v12, %v1759_v10  ;;  %v790_v23 = vsel %vm786_vm6, %v773_v14, %v1760_v9 }
  0x93   :  { %v1765_v16 = vunpack.i.h.bf16 %v1763_v13  ;;  %v1764_v17 = vunpack.i.l.bf16 %v1763_v13  ;;  %v1768_v18 = vpop.permute.xlu1 %1767 }
  0x94   :  { %v1770_v24 = vunpack.i.h.bf16 %v1768_v18  ;;  %v1769_v25 = vunpack.i.l.bf16 %v1768_v18 }
  0x95   :  { %v806_v26 = vsel %vm803_vm7, %v789_v22, %v1764_v17  ;;  %v807_v27 = vsel %vm803_vm7, %v790_v23, %v1765_v16 }
  0x96   :  { %v1773_v28 = vpop.permute.xlu0 %1772  ;;  %v823_v29 = vsel %vm820_vm8, %v806_v26, %v1769_v25  ;;  %v824_v30 = vsel %vm820_vm8, %v807_v27, %v1770_v24 }
  0x97   :  { %v1775_v31 = vunpack.i.h.bf16 %v1773_v28  ;;  %v1774_v32 = vunpack.i.l.bf16 %v1773_v28  ;;  %v1778_v33 = vpop.permute.xlu1 %1777  ;;  %v838_v34 = vpack.c.bf16 %v824_v30, %v823_v29 }
  0x98   :  { %v1780_v37 = vunpack.i.h.bf16 %v1778_v33  ;;  %v1779_v40 = vunpack.i.l.bf16 %v1778_v33 }
  0x99   :  { %v706_v41 = vsel %vm701_vm0, %v2217_v36, %v1774_v32  ;;  %v707_v42 = vsel %vm701_vm0, %v2262_v55, %v1775_v31  ;;  %v860_v43 = vsel %vm852_vm9, %v838_v34, 0 }
  0x9a   :  { %v1783_v44 = vpop.permute.xlu0 %1782  ;;  %1596 = vmatpush3.bf16.xpose.msra.mxu0 %v860_v43  ;;  %v723_v49 = vsel %vm2957_vm1, %v706_v41, %v1779_v40  ;;  %v724_v50 = vsel %vm2957_vm1, %v707_v42, %v1780_v37 }
  0x9b   :  { %v1785_v46 = vunpack.i.h.bf16 %v1783_v44  ;;  %v1784_v47 = vunpack.i.l.bf16 %v1783_v44  ;;  %v1788_v48 = vpop.permute.xlu1 %1787  ;;  %1597 = vmatprep.subr.bf16.mxu0 %v2049_v19 }
  0x9c   :  { %v1790_v51 = vunpack.i.h.bf16 %v1788_v48  ;;  %v1789_v52 = vunpack.i.l.bf16 %v1788_v48 }
  0x9d   :  { %v740_v36 = vsel %vm735_vm2, %v723_v49, %v1784_v47  ;;  %v741_v53 = vsel %vm735_vm2, %v724_v50, %v1785_v46 }
  0x9e   :  { %v1793_v55 = vpop.permute.xlu0 %1792  ;;  %v757_v59 = vsel %vm752_vm3, %v740_v36, %v1789_v52  ;;  %v758_v62 = vsel %vm752_vm3, %v741_v53, %v1790_v51 }
  0x9f   :  { %v1795_v54 = vunpack.i.h.bf16 %v1793_v55  ;;  %v1794_v57 = vunpack.i.l.bf16 %v1793_v55  ;;  %v1798_v58 = vpop.permute.xlu1 %1797 }
  0xa0   :  { %v1800_v63 = vunpack.i.h.bf16 %v1798_v58  ;;  %v1799_v0 = vunpack.i.l.bf16 %v1798_v58 }
  0xa1   :  { %v774_v1 = vsel %vm769_vm5, %v757_v59, %v1794_v57  ;;  %v775_v2 = vsel %vm769_vm5, %v758_v62, %v1795_v54 }
  0xa2   :  { %v1803_v15 = vpop.permute.xlu0 %1802  ;;  %v791_v5 = vsel %vm786_vm6, %v774_v1, %v1799_v0  ;;  %v792_v6 = vsel %vm786_vm6, %v775_v2, %v1800_v63  ;;  %v48_v0 = vld [vmem:[%s2940_s0 + $0x240] sm:$0xff] }
  0xa3   :  { %v1805_v3 = vunpack.i.h.bf16 %v1803_v15  ;;  %v1804_v35 = vunpack.i.l.bf16 %v1803_v15  ;;  %v1808_v4 = vpop.permute.xlu1 %1807 }
  0xa4   :  { %v1810_v7 = vunpack.i.h.bf16 %v1808_v4  ;;  %v1809_v8 = vunpack.i.l.bf16 %v1808_v4 }
  0xa5   :  { %v808_v9 = vsel %vm803_vm7, %v791_v5, %v1804_v35  ;;  %v809_v10 = vsel %vm803_vm7, %v792_v6, %v1805_v3 }
  0xa6   :  { %v1813_v12 = vpop.permute.xlu0 %1812  ;;  %v825_v14 = vsel %vm820_vm8, %v808_v9, %v1809_v8  ;;  %v826_v13 = vsel %vm820_vm8, %v809_v10, %v1810_v7 }
  0xa7   :  { %v1815_v16 = vunpack.i.h.bf16 %v1813_v12  ;;  %v1814_v17 = vunpack.i.l.bf16 %v1813_v12  ;;  %v1818_v18 = vpop.permute.xlu1 %1817  ;;  %v839_v22 = vpack.c.bf16 %v826_v13, %v825_v14 }
  0xa8   :  { %v1820_v23 = vunpack.i.h.bf16 %v1818_v18  ;;  %v1819_v24 = vunpack.i.l.bf16 %v1818_v18 }
  0xa9   :  { %v708_v25 = vsel %vm701_vm0, %v2267_v56, %v1814_v17  ;;  %v709_v26 = vsel %vm701_vm0, %v2312_v11, %v1815_v16  ;;  %v863_v27 = vsel %vm852_vm9, %v839_v22, 0 }
  0xaa   :  { %v1823_v28 = vpop.permute.xlu0 %1822  ;;  %1598 = vmatpush3.bf16.xpose.msra.mxu0 %v863_v27  ;;  %v725_v32 = vsel %vm2957_vm1, %v708_v25, %v1819_v24  ;;  %v726_v33 = vsel %vm2957_vm1, %v709_v26, %v1820_v23 }
  0xab   :  { %v1825_v29 = vunpack.i.h.bf16 %v1823_v28  ;;  %v1824_v30 = vunpack.i.l.bf16 %v1823_v28  ;;  %v1828_v31 = vpop.permute.xlu1 %1827  ;;  %1599 = vmatprep.subr.bf16.mxu0 %v2049_v19 }
  0xac   :  { %v1830_v34 = vunpack.i.h.bf16 %v1828_v31  ;;  %v1829_v37 = vunpack.i.l.bf16 %v1828_v31 }
  0xad   :  { %v742_v56 = vsel %vm735_vm2, %v725_v32, %v1824_v30  ;;  %v743_v40 = vsel %vm735_vm2, %v726_v33, %v1825_v29 }
  0xae   :  { %v1833_v11 = vpop.permute.xlu0 %1832  ;;  %v759_v44 = vsel %vm752_vm3, %v742_v56, %v1829_v37  ;;  %v760_v46 = vsel %vm752_vm3, %v743_v40, %v1830_v34 }
  0xaf   :  { %v1835_v41 = vunpack.i.h.bf16 %v1833_v11  ;;  %v1834_v42 = vunpack.i.l.bf16 %v1833_v11  ;;  %v1838_v43 = vpop.permute.xlu1 %1837 }
  0xb0   :  { %v1840_v47 = vunpack.i.h.bf16 %v1838_v43  ;;  %v1839_v48 = vunpack.i.l.bf16 %v1838_v43 }
  0xb1   :  { %v776_v49 = vsel %vm769_vm5, %v759_v44, %v1834_v42  ;;  %v777_v50 = vsel %vm769_vm5, %v760_v46, %v1835_v41 }
  0xb2   :  { %v1843_v51 = vpop.permute.xlu0 %1842  ;;  %v793_v55 = vsel %vm786_vm6, %v776_v49, %v1839_v48  ;;  %v794_v54 = vsel %vm786_vm6, %v777_v50, %v1840_v47 }
  0xb3   :  { %v1845_v52 = vunpack.i.h.bf16 %v1843_v51  ;;  %v1844_v36 = vunpack.i.l.bf16 %v1843_v51  ;;  %v1848_v53 = vpop.permute.xlu1 %1847 }
  0xb4   :  { %v1850_v57 = vunpack.i.h.bf16 %v1848_v53  ;;  %v1849_v58 = vunpack.i.l.bf16 %v1848_v53 }
  0xb5   :  { %v810_v59 = vsel %vm803_vm7, %v793_v55, %v1844_v36  ;;  %v811_v62 = vsel %vm803_vm7, %v794_v54, %v1845_v52 }
  0xb6   :  { %v1853_v63 = vpop.permute.xlu0 %1852  ;;  %v827_v1 = vsel %vm820_vm8, %v810_v59, %v1849_v58  ;;  %v828_v2 = vsel %vm820_vm8, %v811_v62, %v1850_v57 }
  0xb7   :  { %v1855_v15 = vunpack.i.h.bf16 %v1853_v63  ;;  %v1854_v3 = vunpack.i.l.bf16 %v1853_v63  ;;  %v1858_v35 = vpop.permute.xlu1 %1857  ;;  %v840_v4 = vpack.c.bf16 %v828_v2, %v827_v1 }
  0xb8   :  { %v1860_v5 = vunpack.i.h.bf16 %v1858_v35  ;;  %v1859_v6 = vunpack.i.l.bf16 %v1858_v35 }
  0xb9   :  { %v710_v7 = vsel %vm701_vm0, %v48_v0, %v1854_v3  ;;  %v711_v8 = vsel %vm701_vm0, %v2365_v38, %v1855_v15  ;;  %v866_v9 = vsel %vm852_vm9, %v840_v4, 0 }
  0xba   :  { %v1863_v10 = vpop.permute.xlu0 %1862  ;;  %1600 = vmatpush3.bf16.xpose.msra.mxu0 %v866_v9  ;;  %v727_v16 = vsel %vm2957_vm1, %v710_v7, %v1859_v6  ;;  %v728_v17 = vsel %vm2957_vm1, %v711_v8, %v1860_v5 }
  0xbb   :  { %v1865_v12 = vunpack.i.h.bf16 %v1863_v10  ;;  %v1864_v14 = vunpack.i.l.bf16 %v1863_v10  ;;  %v1868_v13 = vpop.permute.xlu1 %1867  ;;  %1601 = vmatprep.subr.bf16.mxu0 %v2049_v19 }
  0xbc   :  { %v1870_v18 = vunpack.i.h.bf16 %v1868_v13  ;;  %v1869_v22 = vunpack.i.l.bf16 %v1868_v13 }
  0xbd   :  { %v744_v23 = vsel %vm735_vm2, %v727_v16, %v1864_v14  ;;  %v745_v24 = vsel %vm735_vm2, %v728_v17, %v1865_v12 }
  0xbe   :  { %v1873_v38 = vpop.permute.xlu0 %1872  ;;  %v761_v28 = vsel %vm752_vm3, %v744_v23, %v1869_v22  ;;  %v762_v29 = vsel %vm752_vm3, %v745_v24, %v1870_v18 }
  0xbf   :  { %v1875_v25 = vunpack.i.h.bf16 %v1873_v38  ;;  %v1874_v26 = vunpack.i.l.bf16 %v1873_v38  ;;  %v1878_v27 = vpop.permute.xlu1 %1877 }
  0xc0   :  { %v1880_v30 = vunpack.i.h.bf16 %v1878_v27  ;;  %v1879_v31 = vunpack.i.l.bf16 %v1878_v27 }
  0xc1   :  { %v778_v32 = vsel %vm769_vm5, %v761_v28, %v1874_v26  ;;  %v779_v33 = vsel %vm769_vm5, %v762_v29, %v1875_v25 }
  0xc2   :  { %v1883_v34 = vpop.permute.xlu0 %1882  ;;  %v795_v11 = vsel %vm786_vm6, %v778_v32, %v1879_v31  ;;  %v796_v41 = vsel %vm786_vm6, %v779_v33, %v1880_v30 }
  0xc3   :  { %v1885_v37 = vunpack.i.h.bf16 %v1883_v34  ;;  %v1884_v56 = vunpack.i.l.bf16 %v1883_v34  ;;  %v1888_v40 = vpop.permute.xlu1 %1887 }
  0xc4   :  { %v1890_v42 = vunpack.i.h.bf16 %v1888_v40  ;;  %v1889_v43 = vunpack.i.l.bf16 %v1888_v40 }
  0xc5   :  { %v812_v44 = vsel %vm803_vm7, %v795_v11, %v1884_v56  ;;  %v813_v46 = vsel %vm803_vm7, %v796_v41, %v1885_v37 }
  0xc6   :  { %v1893_v47 = vpop.permute.xlu0 %1892  ;;  %v829_v48 = vsel %vm820_vm8, %v812_v44, %v1889_v43  ;;  %v830_v49 = vsel %vm820_vm8, %v813_v46, %v1890_v42 }
  0xc7   :  { %v1895_v50 = vunpack.i.h.bf16 %v1893_v47  ;;  %v1894_v51 = vunpack.i.l.bf16 %v1893_v47  ;;  %v1898_v52 = vpop.permute.xlu1 %1897  ;;  %v841_v36 = vpack.c.bf16 %v830_v49, %v829_v48 }
  0xc8   :  { %v1900_v53 = vunpack.i.h.bf16 %v1898_v52  ;;  %v1899_v55 = vunpack.i.l.bf16 %v1898_v52 }
  0xc9   :  { %v712_v54 = vsel %vm701_vm0, %v2370_v39, %v1894_v51  ;;  %v713_v57 = vsel %vm701_vm0, %v2415_v60, %v1895_v50  ;;  %v869_v58 = vsel %vm852_vm9, %v841_v36, 0 }
  0xca   :  { %v1903_v59 = vpop.permute.xlu0 %1902  ;;  %1602 = vmatpush3.bf16.xpose.msra.mxu0 %v869_v58  ;;  %v729_v1 = vsel %vm2957_vm1, %v712_v54, %v1899_v55  ;;  %v730_v2 = vsel %vm2957_vm1, %v713_v57, %v1900_v53 }
  0xcb   :  { %v1905_v62 = vunpack.i.h.bf16 %v1903_v59  ;;  %v1904_v63 = vunpack.i.l.bf16 %v1903_v59  ;;  %v1908_v0 = vpop.permute.xlu1 %1907  ;;  %1603 = vmatprep.subr.bf16.mxu0 %v2049_v19 }
  0xcc   :  { %v1910_v15 = vunpack.i.h.bf16 %v1908_v0  ;;  %v1909_v3 = vunpack.i.l.bf16 %v1908_v0 }
  0xcd   :  { %v746_v39 = vsel %vm735_vm2, %v729_v1, %v1904_v63  ;;  %v747_v35 = vsel %vm735_vm2, %v730_v2, %v1905_v62 }
  0xce   :  { %v1913_v60 = vpop.permute.xlu0 %1912  ;;  %v763_v7 = vsel %vm752_vm3, %v746_v39, %v1909_v3  ;;  %v764_v8 = vsel %vm752_vm3, %v747_v35, %v1910_v15 }
  0xcf   :  { %v1915_v4 = vunpack.i.h.bf16 %v1913_v60  ;;  %v1914_v5 = vunpack.i.l.bf16 %v1913_v60  ;;  %v1918_v6 = vpop.permute.xlu1 %1917 }
  0xd0   :  { %v1920_v9 = vunpack.i.h.bf16 %v1918_v6  ;;  %v1919_v10 = vunpack.i.l.bf16 %v1918_v6 }
  0xd1   :  { %v780_v12 = vsel %vm769_vm5, %v763_v7, %v1914_v5  ;;  %v781_v14 = vsel %vm769_vm5, %v764_v8, %v1915_v4 }
  0xd2   :  { %v1923_v13 = vpop.permute.xlu0 %1922  ;;  %v797_v22 = vsel %vm786_vm6, %v780_v12, %v1919_v10  ;;  %v798_v23 = vsel %vm786_vm6, %v781_v14, %v1920_v9 }
  0xd3   :  { %v1925_v16 = vunpack.i.h.bf16 %v1923_v13  ;;  %v1924_v17 = vunpack.i.l.bf16 %v1923_v13  ;;  %v1928_v18 = vpop.permute.xlu1 %1927 }
  0xd4   :  { %v1930_v24 = vunpack.i.h.bf16 %v1928_v18  ;;  %v1929_v38 = vunpack.i.l.bf16 %v1928_v18 }
  0xd5   :  { %v814_v25 = vsel %vm803_vm7, %v797_v22, %v1924_v17  ;;  %v815_v26 = vsel %vm803_vm7, %v798_v23, %v1925_v16 }
  0xd6   :  { %v1933_v27 = vpop.permute.xlu0 %1932  ;;  %v831_v28 = vsel %vm820_vm8, %v814_v25, %v1929_v38  ;;  %v832_v29 = vsel %vm820_vm8, %v815_v26, %v1930_v24 }
  0xd7   :  { %v1935_v30 = vunpack.i.h.bf16 %v1933_v27  ;;  %v1934_v31 = vunpack.i.l.bf16 %v1933_v27  ;;  %v1938_v32 = vpop.permute.xlu1 %1937  ;;  %v842_v33 = vpack.c.bf16 %v832_v29, %v831_v28 }
  0xd8   :  { %v1940_v34 = vunpack.i.h.bf16 %v1938_v32  ;;  %v1939_v37 = vunpack.i.l.bf16 %v1938_v32 }
  0xd9   :  { %v714_v56 = vsel %vm701_vm0, %v2420_v61, %v1934_v31  ;;  %v715_v40 = vsel %vm701_vm0, %v2465_v20, %v1935_v30  ;;  %v872_v11 = vsel %vm852_vm9, %v842_v33, 0 }
  0xda   :  { %v1943_v41 = vpop.permute.xlu0 %1942  ;;  %1604 = vmatpush3.bf16.xpose.msra.mxu0 %v872_v11  ;;  %v731_v46 = vsel %vm2957_vm1, %v714_v56, %v1939_v37  ;;  %v732_v47 = vsel %vm2957_vm1, %v715_v40, %v1940_v34 }
  0xdb   :  { %v1945_v42 = vunpack.i.h.bf16 %v1943_v41  ;;  %v1944_v43 = vunpack.i.l.bf16 %v1943_v41  ;;  %v1948_v44 = vpop.permute.xlu1 %1947  ;;  %1605 = vmatprep.subr.bf16.mxu0 %v2049_v19 }
  0xdc   :  { %v1950_v48 = vunpack.i.h.bf16 %v1948_v44  ;;  %v1949_v49 = vunpack.i.l.bf16 %v1948_v44 }
  0xdd   :  { %v748_v61 = vsel %vm735_vm2, %v731_v46, %v1944_v43  ;;  %v749_v50 = vsel %vm735_vm2, %v732_v47, %v1945_v42 }
  0xde   :  { %v1953_v20 = vpop.permute.xlu0 %1952  ;;  %v765_v53 = vsel %vm752_vm3, %v748_v61, %v1949_v49  ;;  %v766_v55 = vsel %vm752_vm3, %v749_v50, %v1950_v48 }
  0xdf   :  { %v1955_v51 = vunpack.i.h.bf16 %v1953_v20  ;;  %v1954_v52 = vunpack.i.l.bf16 %v1953_v20  ;;  %v1958_v36 = vpop.permute.xlu1 %1957 }
  0xe0   :  { %v1960_v54 = vunpack.i.h.bf16 %v1958_v36  ;;  %v1959_v57 = vunpack.i.l.bf16 %v1958_v36  ;;  %v845_v36 = vld [vmem:[%s2941_s1] sm:$0xf]  ;;  %s2059_s1 = smov 120  }
  0xe1   :  { %v782_v58 = vsel %vm769_vm5, %v765_v53, %v1954_v52  ;;  %v783_v59 = vsel %vm769_vm5, %v766_v55, %v1955_v51 }
  0xe2   :  { %v1963_v62 = vpop.permute.xlu0 %1962  ;;  %v799_v2 = vsel %vm786_vm6, %v782_v58, %v1959_v57  ;;  %v800_v15 = vsel %vm786_vm6, %v783_v59, %v1960_v54 }
  0xe3   :  { %v1965_v63 = vunpack.i.h.bf16 %v1963_v62  ;;  %v1964_v0 = vunpack.i.l.bf16 %v1963_v62  ;;  %v1968_v1 = vpop.permute.xlu1 %1967  ;;  %v920_v62 = vlaneseq }
  0xe4   :  { %v1970_v3 = vunpack.i.h.bf16 %v1968_v1  ;;  %v1969_v39 = vunpack.i.l.bf16 %v1968_v1 }
  0xe5   :  { %v816_v35 = vsel %vm803_vm7, %v799_v2, %v1964_v0  ;;  %v817_v60 = vsel %vm803_vm7, %v800_v15, %v1965_v63  ;;  %v921_v63 = vand.u32 127, %v920_v62 }
  0xe6   :  { %v1973_v4 = vpop.permute.xlu0 %1972  ;;  %v833_v5 = vsel %vm820_vm8, %v816_v35, %v1969_v39  ;;  %v834_v6 = vsel %vm820_vm8, %v817_v60, %v1970_v3 }
  0xe7   :  { %v1975_v7 = vunpack.i.h.bf16 %v1973_v4  ;;  %v1974_v8 = vunpack.i.l.bf16 %v1973_v4  ;;  %v1978_v9 = vpop.permute.xlu1 %1977  ;;  %v843_v10 = vpack.c.bf16 %v834_v6, %v833_v5  ;;  %v923_v0 = vshra.s32 %v921_v63, 3 }
  0xe8   :  { %v1980_v12 = vunpack.i.h.bf16 %v1978_v9  ;;  %v1979_v14 = vunpack.i.l.bf16 %v1978_v9  ;;  %v922_v2 = vand.u32 7, %v921_v63 }
  0xe9   :  { %v716_v13 = vsel %vm701_vm0, %v2470_v21, %v1974_v8  ;;  %v717_v16 = vsel %vm701_vm0, %v2521_v45, %v1975_v7  ;;  %v875_v17 = vsel %vm852_vm9, %v843_v10, 0  ;;  %v924_v1 = vand.u32 7, %v923_v0 }
  0xea   :  { %v1983_v18 = vpop.permute.xlu0 %1982  ;;  %1606 = vmatpush3.bf16.xpose.msra.mxu0 %v875_v17  ;;  %v733_v38 = vsel %vm2957_vm1, %v716_v13, %v1979_v14  ;;  %v734_v25 = vsel %vm2957_vm1, %v717_v16, %v1980_v12  ;;  %vm2737_vm13 = vcmp.ge.s32.totalorder %v922_v2, 1  ;;  %v937_v35 = vadd.s32 2, %v922_v2  ;;  %v1110_v2 = vld [vmem:[%s2945_s5] sm:$0xff] }
  0xeb   :  { %v1985_v22 = vunpack.i.h.bf16 %v1983_v18  ;;  %v1984_v23 = vunpack.i.l.bf16 %v1983_v18  ;;  %v1988_v24 = vpop.permute.xlu1 %1987  ;;  %1607 = vmatprep.subr.bf16.mxu0 %v2049_v19  ;;  %vm925_vm10 = vcmp.ge.s32.totalorder %v924_v1, 1  ;;  %vm926_vm11 = vcmp.le.s32.totalorder %v924_v1, 8 }
  0xec   :  { %v1990_v26 = vunpack.i.h.bf16 %v1988_v24  ;;  %v1989_v27 = vunpack.i.l.bf16 %v1988_v24  ;;  %v942_v15 = vadd.s32 1, %v924_v1  ;;  %vm2733_vm12 = vmand %vm925_vm10, %vm926_vm11  ;;  %v952_v8 = vadd.s32 2, %v924_v1 }
  0xed   :  { %v750_v21 = vsel %vm735_vm2, %v733_v38, %v1984_v23  ;;  %v751_v28 = vsel %vm735_vm2, %v734_v25, %v1985_v22  ;;  %vm929_vm0 = vmand %vm2733_vm12, %vm2737_vm13  ;;  %vm2952_vm2 = vcmask 72704   ;;  %vm2954_vm11 = vcmask 1039360  }
  0xee   :  { %v1993_v45 = vpop.permute.xlu0 %1992  ;;  %v767_v32 = vsel %vm752_vm3, %v750_v21, %v1989_v27  ;;  %v768_v33 = vsel %vm752_vm3, %v751_v28, %v1990_v26  ;;  %vm943_vm14 = vcmp.ge.s32.totalorder %v942_v15, 1  ;;  %vm944_vm15 = vcmp.le.s32.totalorder %v942_v15, 8  ;;  %v1103_v15 = vld [vmem:[%s2944_s4] sm:$0xff] }
  0xef   :  { %v1995_v29 = vunpack.i.h.bf16 %v1993_v45  ;;  %v1994_v30 = vunpack.i.l.bf16 %v1993_v45  ;;  %v1998_v31 = vpop.permute.xlu1 %1997  ;;  %vm940_vm3 = vcmp.le.s32.totalorder %v937_v35, 8 }
  0xf0   :  { %v2000_v34 = vunpack.i.h.bf16 %v1998_v31  ;;  %v1999_v37 = vunpack.i.l.bf16 %v1998_v31  ;;  %v1360_v31 = vld [vmem:[%s2949_s9] sm:$0xf] }
  0xf1   :  { %v784_v56 = vsel %vm769_vm5, %v767_v32, %v1994_v30  ;;  %v785_v40 = vsel %vm769_vm5, %v768_v33, %v1995_v29  ;;  %vm2745_vm5 = vmand %vm943_vm14, %vm944_vm15  ;;  %vm953_vm14 = vcmp.ge.s32.totalorder %v952_v8, 1  ;;  %vm954_vm15 = vcmp.le.s32.totalorder %v952_v8, 8 }
  0xf2   :  { %v2003_v11 = vpop.permute.xlu0 %2002  ;;  %v801_v44 = vsel %vm786_vm6, %v784_v56, %v1999_v37  ;;  %v802_v46 = vsel %vm786_vm6, %v785_v40, %v2000_v34  ;;  %vm2751_vm6 = vmpackc.low %vm2733_vm12, %vm929_vm0  ;;  %v1016_v56 = vld [vmem:[%s2943_s3] sm:$0xf]  ;;  %s2063_s3 = smov 64  }
  0xf3   :  { %v2005_v41 = vunpack.i.h.bf16 %v2003_v11  ;;  %v2004_v42 = vunpack.i.l.bf16 %v2003_v11  ;;  %v2008_v43 = vpop.permute.xlu1 %2007  ;;  %vm946_vm10 = vmand %vm2745_vm5, %vm2737_vm13 }
  0xf4   :  { %v2010_v47 = vunpack.i.h.bf16 %v2008_v43  ;;  %v2009_v48 = vunpack.i.l.bf16 %v2008_v43  ;;  %vm2776_vm0 = vmand %vm2745_vm5, %vm940_vm3 }
  0xf5   :  { %v818_v49 = vsel %vm803_vm7, %v801_v44, %v2004_v42  ;;  %v819_v61 = vsel %vm803_vm7, %v802_v46, %v2005_v41  ;;  %vm941_vm7 = vmand %vm2733_vm12, %vm940_vm3 }
  0xf6   :  { %v835_v50 = vsel %vm820_vm8, %v818_v49, %v2009_v48  ;;  %v836_v20 = vsel %vm820_vm8, %v819_v61, %v2010_v47  ;;  %vm2953_vm8 = vcmask 56320   ;;  %vm2769_vm12 = vmpackc.low %vm946_vm10, %vm941_vm7  ;;  %vm996_vm7 = vcmask 990208  }
  0xf7   :  { %v844_v51 = vpack.c.bf16 %v836_v20, %v835_v50  ;;  %vm1549_vm10 = vmpackc.low %vm2776_vm0, %vm2745_vm5  ;;  %vm2981_vm5 = vcmask 523264  }
  0xf9   :  { %v878_v52 = vsel %vm852_vm9, %v844_v51, 0 }
  0xfa   :  { %1608 = vmatpush3.bf16.xpose.msra.mxu0 %v878_v52 }
 0x101   :  { %1610 = vmatmul.mubr.msk.bf16.vlgmr.msra.gmra.mrb[0].mxu0 %vm852_vm9, %v845_v36  ;;  %vm983_vm9 = vcmask 7168  }
 0x103   :  { %v850_v53 = vpop.permute.xlu0 %849 }
 0x1d4   :  { %v914_v55 = vpop.f32.mrb[0].mxu0 }
 0x1d5   :  { %v2715_v54 = vadd.f32 %v914_v55, %v850_v53  ;;  %v1611_v57 = vpop.f32.mrb[1].mxu0 }
 0x1d6   :  { %v917_v58 = vpop.f32.mrb[2].mxu0 }
 0x1d7   :  { %974 = vrot.lane.b32.xlu0 %v2715_v54, %s2056_s19  ;;  %963 = vrot.lane.b32.xlu1 %v2715_v54, %s2057_s20  ;;  %v1612_v59 = vpop.f32.mrb[3].mxu0  ;;  %v1361_v23 = vpack.c.bf16 %v2715_v54, %v2715_v54 }
 0x1db   :  { %987 = vrot.lane.b32.xlu0 %v2715_v54, %s2058_s27  ;;  %969 = vrot.lane.b32.xlu1 %v2715_v54, %s2047_s24 }
 0x1df   :  { %999 = vrot.lane.b32.xlu0 %v2715_v54, %s2059_s1  ;;  %980 = vrot.lane.b32.xlu1 %v2715_v54, %s2060_s28 }
 0x1e3   :  { %993 = vrot.lane.b32.xlu1 %v2715_v54, %s2061_s29 }
 0x1e7   :  { %1005 = vrot.lane.b32.xlu1 %v2715_v54, %s2062_s13 }
 0x249   :  { %v964_v60 = vpop.permute.xlu1 %963  ;;  %v975_v4 = vpop.permute.xlu0 %974 }
 0x24a   :  { %v967_v9 = vsel %vm2952_vm2, 0.0, %v964_v60  ;;  %v978_v16 = vsel %vm2953_vm8, 0.0, %v975_v4  ;;  %vm2781_vm2 = vmand %vm953_vm14, %vm954_vm15  ;;  %vm1002_vm8 = vcmask 982016   ;;  %vm1008_vm14 = vcmask 973824  }
 0x24b   :  { %vm956_vm15 = vmand %vm2781_vm2, %vm2737_vm13 }
 0x24c   :  { %vm2815_vm13 = vmpackc.low %vm2781_vm2, %vm956_vm15  ;;  %vm2955_vm15 = vcmask 523264  }
 0x24d   :  { %v970_v6 = vpop.permute.xlu1 %969  ;;  %v988_v14 = vpop.permute.xlu0 %987 }
 0x24e   :  { %v972_v10 = vsel %vm2957_vm1, 0.0, %v970_v6  ;;  %v991_v24 = vsel %vm2954_vm11, %v988_v14, 0.0  ;;  %vm2801_vm11 = vmand %vm2781_vm2, %vm940_vm3  ;;  %vm1021_vm3 = vcmask 1043456   ;;  %vm1017_vm2 = vcmask 588800  }
 0x24f   :  { %v1544_v12 = vpack.c.bf16 %v972_v10, %v967_v9  ;;  %v1550_v26 = vpack.c.bf16 %v991_v24, %v2715_v54  ;;  %v1372_v28 = vsel %vm1021_vm3, %v1361_v23, 0 }
 0x251   :  { %1614 = vmatpush3.bf16.msk.msra.mxu1 %vm2751_vm6, %v1544_v12  ;;  %v981_v13 = vpop.permute.xlu1 %980  ;;  %v1000_v27 = vpop.permute.xlu0 %999 }
 0x252   :  { %v984_v17 = vsel %vm983_vm9, 0.0, %v981_v13  ;;  %1615 = vmatprep.subr.bf16.mxu1 %v2049_v19  ;;  %v1003_v29 = vsel %vm1002_vm8, %v1000_v27, 0.0 }
 0x253   :  { %v1547_v22 = vpack.c.bf16 %v984_v17, %v978_v16 }
 0x255   :  { %1616 = vmatpush3.bf16.msk.msra.mxu1 %vm2769_vm12, %v1547_v22  ;;  %v994_v25 = vpop.permute.xlu1 %993 }
 0x256   :  { %1617 = vmatprep.subr.bf16.mxu1 %v2049_v19  ;;  %v997_v21 = vsel %vm996_vm7, %v994_v25, 0.0 }
 0x257   :  { %v1553_v32 = vpack.c.bf16 %v1003_v29, %v997_v21 }
 0x259   :  { %1618 = vmatpush3.bf16.msk.msra.mxu1 %vm1549_vm10, %v1550_v26  ;;  %v1006_v45 = vpop.permute.xlu1 %1005 }
 0x25a   :  { %v1009_v30 = vsel %vm1008_vm14, %v1006_v45, 0.0  ;;  %1619 = vmatprep.subr.bf16.mxu1 %v2049_v19 }
 0x25b   :  { %v1010_v33 = vsel %vm2801_vm11, %v1009_v30, 0.0 }
 0x25c   :  { %v1015_v34 = vpack.c.bf16 %v1010_v33, %v1010_v33 }
 0x25d   :  { %1620 = vmatpush3.bf16.msk.msra.mxu1 %vm2815_vm13, %v1553_v32 }
 0x25e   :  { %1621 = vmatprep.subr.bf16.mxu1 %v2049_v19  ;;  %v1023_v37 = vsel %vm1021_vm3, %v1015_v34, 0 }
 0x261   :  { %1622 = vmatpush3.bf16.msra.mxu1 %v1023_v37 }
 0x262   :  { %1627 = vmatprep.subr.bf16.mxu1 %v2049_v19 }
 0x264   :  { %1624 = vmatmul.mubr.msk.bf16.vlgmr.msra.gmra.mrb[0].mxu1 %vm1017_vm2, %v1016_v56 }
 0x265   :  { %1637 = vmatprep.mubr.msk.bf16.mxu1 %vm2956_vm4, %v2049_v19  ;;  %vm2977_vm4 = vcmask 56320  }
 0x337   :  { %v2832_v40 = vpop.f32.mrb[0].mxu1 }
 0x338   :  { %v1625_v11 = vpop.f32.mrb[1].mxu1  ;;  %v1066_v41 = vsel %vm2955_vm15, %v2832_v40, 0.0  ;;  %v1079_v42 = vmul.f32 %v2832_v40, %v2832_v40 }
 0x339   :  { %1067 = vadd.xlane.f32.xlu0 %v1066_v41  ;;  %v1062_v43 = vpop.f32.mrb[2].mxu1 }
 0x33a   :  { %v1626_v44 = vpop.f32.mrb[3].mxu1  ;;  %v1080_v46 = vsel %vm2955_vm15, %v1079_v42, 0.0 }
 0x33b   :  { %1081 = vadd.xlane.f32.xlu1 %v1080_v46 }
 0x34c   :  { %1136 = vrot.lane.b32.xlu1 %v1079_v42, %s2063_s3 }
 0x34f   :  { %1119 = vrot.lane.b32.xlu0 %v2832_v40, %s2063_s3 }
 0x3c6   :  { %v1068_v47 = vpop.xlane.xlu0 %1067 }
 0x3c7   :  { %v1069_v48 = vrot.slane %v1068_v47, 4 }
 0x3c8   :  { %v1082_v49 = vpop.xlane.xlu1 %1081 }
 0x3c9   :  { %v1070_v61 = vadd.f32 %v1069_v48, %v1068_v47  ;;  %v1083_v50 = vrot.slane %v1082_v49, 4 }
 0x3ca   :  { %v1120_v20 = vpop.permute.xlu0 %1119 }
 0x3cb   :  { %v1071_v51 = vrot.slane %v1070_v61, 2  ;;  %v1084_v52 = vadd.f32 %v1083_v50, %v1082_v49  ;;  %v1122_v36 = vsel %vm2955_vm15, %v1120_v20, 0.0 }
 0x3cc   :  { %v1137_v53 = vpop.permute.xlu1 %1136  ;;  %1123 = vadd.xlane.f32.xlu0 %v1122_v36 }
 0x3cd   :  { %v1085_v55 = vrot.slane %v1084_v52, 2  ;;  %v1139_v57 = vsel %vm2955_vm15, %v1137_v53, 0.0  ;;  %v1072_v58 = vadd.f32 %v1071_v51, %v1070_v61 }
 0x3ce   :  { %1140 = vadd.xlane.f32.xlu1 %v1139_v57 }
 0x3cf   :  { %v1073_v59 = vrot.slane %v1072_v58, 1  ;;  %v1086_v62 = vadd.f32 %v1085_v55, %v1084_v52 }
 0x3d1   :  { %v1074_v63 = vadd.f32 %v1073_v59, %v1072_v58  ;;  %v1087_v0 = vrot.slane %v1086_v62, 1 }
 0x3d3   :  { %1647 = vpush %v1074_v63  ;;  %v1088_v1 = vadd.f32 %v1087_v0, %v1086_v62 }
 0x3d5   :  { %1649 = vpush %v1088_v1 }
 0x3df   :  { %1113 = vperm.xlu1 %2012, %v1110_v2  }
 0x3e2   :  { %1106 = vperm.xlu0 %2011, %v1103_v15   ;;  %v1213_v15 = vld [vmem:[%s2946_s6] sm:$0xf] }
 0x404   :  { %s1648_s23 = spop %1647 }
 0x405   :  { %s1078_s26 = smul.f32 0.001953125, %s1648_s23 }
 0x406   :  { %s1650_s15 = spop %1649 }
 0x407   :  { %s1093_s25 = smul.f32 %s1078_s26, %s1078_s26  ;;  %v1095_v3 = vstv %s1078_s26 }
 0x408   :  { %s1092_s2 = smul.f32 0.001953125, %s1650_s15  ;;  %v1096_v39 = vsub.f32 %v2832_v40, %v1095_v3 }
 0x40a   :  { %s1094_s30 = ssub.f32 %s1092_s2, %s1093_s25 }
 0x40c   :  { %s1097_s0 = sadd.f32 1e-05, %s1094_s30 }
 0x40e   :  { %v1098_v35 = vstv %s1097_s0 }
 0x40f   :  { %2013 = vrsqrt.f32 %v1098_v35 }
 0x419   :  { %v2014_v60 = vpop.eup %2013 }
 0x41a   :  { %1651 = vpush %v2014_v60 }
 0x44b   :  { %s1652_s4 = spop %1651 }
 0x44c   :  { %v1101_v29 = vstv %s1652_s4 }
 0x44d   :  { %v1102_v32 = vmul.f32 %v1101_v29, %v1096_v39 }
 0x459   :  { %v1124_v4 = vpop.xlane.xlu0 %1123 }
 0x45a   :  { %v1125_v6 = vrot.slane %v1124_v4, 4 }
 0x45b   :  { %v1141_v8 = vpop.xlane.xlu1 %1140 }
 0x45c   :  { %v1126_v9 = vadd.f32 %v1125_v6, %v1124_v4  ;;  %v1142_v10 = vrot.slane %v1141_v8, 4 }
 0x45e   :  { %v1127_v12 = vrot.slane %v1126_v9, 2  ;;  %v1143_v14 = vadd.f32 %v1142_v10, %v1141_v8 }
 0x45f   :  { %v1114_v34 = vpop.permute.xlu1 %1113 }
 0x460   :  { %v1144_v13 = vrot.slane %v1143_v14, 2  ;;  %v1128_v16 = vadd.f32 %v1127_v12, %v1126_v9 }
 0x461   :  { %v1107_v30 = vpop.permute.xlu0 %1106 }
 0x462   :  { %v1129_v17 = vrot.slane %v1128_v16, 1  ;;  %v1145_v22 = vadd.f32 %v1144_v13, %v1143_v14  ;;  %v1109_v33 = vmul.f32 %v1107_v30, %v1102_v32  ;;  %v1297_v32 = vld [vmem:[%s2947_s7] sm:$0xff] }
 0x464   :  { %v1130_v24 = vadd.f32 %v1129_v17, %v1128_v16  ;;  %v1146_v38 = vrot.slane %v1145_v22, 1  ;;  %v1116_v11 = vadd.f32 %v1114_v34, %v1109_v33  ;;  %v1362_v33 = vld [vmem:[%s2950_s10] sm:$0xff] }
 0x466   :  { %1653 = vpush %v1130_v24  ;;  %v1147_v25 = vadd.f32 %v1146_v38, %v1145_v22  ;;  %v1117_v43 = vmax.f32 %v1116_v11, 0.0 }
 0x468   :  { %1655 = vpush %v1147_v25 }
 0x497   :  { %s1654_s5 = spop %1653 }
 0x498   :  { %s1134_s12 = smul.f32 0.001953125, %s1654_s5 }
 0x499   :  { %s1656_s16 = spop %1655 }
 0x49a   :  { %s1152_s14 = smul.f32 %s1134_s12, %s1134_s12  ;;  %v1154_v26 = vstv %s1134_s12 }
 0x49b   :  { %s1151_s17 = smul.f32 0.001953125, %s1656_s16  ;;  %v1155_v27 = vsub.f32 %v2832_v40, %v1154_v26 }
 0x49d   :  { %s1153_s18 = ssub.f32 %s1151_s17, %s1152_s14  ;;  %s2064_s17 = smov [#allocation2]  }
 0x49f   :  { %s1156_s21 = sadd.f32 1e-05, %s1153_s18  ;;  %s1422_s18 = sshll.u32 %s2064_s17, 4  ;;  %s1423_s18 = int_to_ptr.vmem [resolvable:$true] %s1422_s18 }
 0x4a0   :  { %p2026_p1 = scmp.lt.s32.totalorder %s1423_s18, %s1423_s18 }
 0x4a1   :  { %v1157_v21 = vstv %s1156_s21  ;;  %s2021_s21 = scalar_lea.vmem %s1423_s18, 128 }
 0x4a2   :  { %2015 = vrsqrt.f32 %v1157_v21  ;;  %p2022_p0 = scmp.ne.s32.totalorder %s1423_s18, %s2021_s21  ;;  %p2027_p2 = scmp.lt.s32.totalorder %s2021_s21, %s2021_s21 }
 0x4a4   :  { %p2028_p3 = por %p2027_p2, %p2026_p1 }
 0x4a6   :  { %p2029_p4 = pnand %p2028_p3, %p2022_p0 }
 0x4ac   :  { %v2016_v45 = vpop.eup %2015 }
 0x4ad   :  { %1657 = vpush %v2016_v45 }
 0x4de   :  { %s1658_s22 = spop %1657 }
 0x4df   :  { %v1160_v37 = vstv %s1658_s22 }
 0x4e0   :  { %v1161_v56 = vmul.f32 %v1160_v37, %v1155_v27 }
 0x4e2   :  { %v1162_v41 = vmul.f32 %v1161_v56, %v1107_v30  ;;  %v1304_v30 = vld [vmem:[%s2948_s8] sm:$0xff] }
 0x4e4   :  { %v1163_v42 = vadd.f32 %v1162_v41, %v1114_v34 }
 0x4e6   :  { %v1164_v44 = vmax.f32 %v1163_v42, 0.0 }
 0x4e8   :  { %v1165_v40 = vsel %vm2955_vm15, %v1117_v43, %v1164_v44  ;;  %vm2976_vm15 = vcmask 72704  }
 0x4e9   :  { %1172 = vrot.lane.b32.xlu1 %v1165_v40, %s2047_s24  ;;  %1167 = vrot.lane.b32.xlu0 %v1165_v40, %s2057_s20 }
 0x4ed   :  { %1182 = vrot.lane.b32.xlu1 %v1165_v40, %s2060_s28  ;;  %1177 = vrot.lane.b32.xlu0 %v1165_v40, %s2056_s19 }
 0x4f1   :  { %1193 = vrot.lane.b32.xlu1 %v1165_v40, %s2061_s29  ;;  %1188 = vrot.lane.b32.xlu0 %v1165_v40, %s2058_s27 }
 0x4f5   :  { %1203 = vrot.lane.b32.xlu1 %v1165_v40, %s2062_s13  ;;  %1198 = vrot.lane.b32.xlu0 %v1165_v40, %s2059_s1 }
 0x55b   :  { %v1173_v46 = vpop.permute.xlu1 %1172  ;;  %v1168_v47 = vpop.permute.xlu0 %1167 }
 0x55c   :  { %v1175_v48 = vsel %vm2957_vm1, 0.0, %v1173_v46  ;;  %v1170_v49 = vsel %vm2976_vm15, 0.0, %v1168_v47  ;;  %vm2978_vm1 = vcmask 1039360  }
 0x55d   :  { %v1557_v61 = vpack.c.bf16 %v1175_v48, %v1170_v49 }
 0x55f   :  { %v1183_v50 = vpop.permute.xlu1 %1182  ;;  %1628 = vmatpush3.bf16.msk.msra.mxu1 %vm2751_vm6, %v1557_v61  ;;  %v1178_v20 = vpop.permute.xlu0 %1177  ;;  %vm2982_vm6 = vmmov %vm2981_vm5 }
 0x560   :  { %v1185_v51 = vsel %vm983_vm9, 0.0, %v1183_v50  ;;  %v1180_v52 = vsel %vm2977_vm4, 0.0, %v1178_v20  ;;  %1629 = vmatprep.subr.bf16.mxu1 %v2049_v19  ;;  %vm2980_vm4 = vcmask 64512   ;;  %vm2984_vm9 = vmmov %vm2981_vm5 }
 0x561   :  { %v1560_v36 = vpack.c.bf16 %v1185_v51, %v1180_v52 }
 0x563   :  { %v1194_v53 = vpop.permute.xlu1 %1193  ;;  %1630 = vmatpush3.bf16.msk.msra.mxu1 %vm2769_vm12, %v1560_v36  ;;  %v1189_v55 = vpop.permute.xlu0 %1188 }
 0x564   :  { %v1191_v57 = vsel %vm2978_vm1, %v1189_v55, 0.0  ;;  %1631 = vmatprep.subr.bf16.mxu1 %v2049_v19  ;;  %v1196_v62 = vsel %vm996_vm7, %v1194_v53, 0.0  ;;  %vm2979_vm1 = vmmov 0  }
 0x565   :  { %v1563_v58 = vpack.c.bf16 %v1191_v57, %v1165_v40 }
 0x567   :  { %v1204_v7 = vpop.permute.xlu1 %1203  ;;  %1632 = vmatpush3.bf16.msk.msra.mxu1 %vm1549_vm10, %v1563_v58  ;;  %v1199_v59 = vpop.permute.xlu0 %1198 }
 0x568   :  { %v1206_v63 = vsel %vm1008_vm14, %v1204_v7, 0.0  ;;  %v1201_v18 = vsel %vm1002_vm8, %v1199_v59, 0.0  ;;  %1633 = vmatprep.subr.bf16.mxu1 %v2049_v19  ;;  %vm2983_vm8 = vmmov %vm2981_vm5 }
 0x569   :  { %v1207_v0 = vsel %vm2801_vm11, %v1206_v63, 0.0  ;;  %v1566_v1 = vpack.c.bf16 %v1201_v18, %v1196_v62  ;;  %vm2985_vm11 = vmmov %vm2981_vm5 }
 0x56a   :  { %v1212_v2 = vpack.c.bf16 %v1207_v0, %v1207_v0 }
 0x56b   :  { %1634 = vmatpush3.bf16.msk.msra.mxu1 %vm2815_vm13, %v1566_v1 }
 0x56c   :  { %1635 = vmatprep.subr.bf16.mxu1 %v2049_v19  ;;  %v1218_v5 = vsel %vm1021_vm3, %v1212_v2, 0 }
 0x56f   :  { %1636 = vmatpush3.bf16.msra.mxu1 %v1218_v5 }
 0x570   :  { %1641 = vmatprep.subr.bf16.mxu1 %v2049_v19 }
 0x572   :  { %1638 = vmatmul.mubr.msk.bf16.vlgmr.msra.gmra.mrb[4].mxu1 %vm1017_vm2, %v1213_v15 }
 0x573   :  { %1642 = vmatpush3.bf16.msra.mxu1 %v1372_v28  ;;  %1643 = vmatprep.mubr.msk.bf16.mxu1 %vm2979_vm1, %v2049_v19 }
 0x57a   :  { %1644 = vmatmul.mubr.msk.bf16.vlgmr.msra.gmra.mrb[8].mxu1 %vm2980_vm4, %v1360_v31 }
 0x645   :  { %v2901_v54 = vpop.f32.mrb[4].mxu1 }
 0x646   :  { %v1639_v3 = vpop.f32.mrb[5].mxu1  ;;  %v1260_v39 = vsel %vm2981_vm5, %v2901_v54, 0.0  ;;  %v1273_v35 = vmul.f32 %v2901_v54, %v2901_v54 }
 0x647   :  { %1261 = vadd.xlane.f32.xlu0 %v1260_v39  ;;  %v1257_v60 = vpop.f32.mrb[6].mxu1 }
 0x648   :  { %v1640_v4 = vpop.f32.mrb[7].mxu1  ;;  %v1274_v19 = vsel %vm2982_vm6, %v1273_v35, 0.0 }
 0x649   :  { %1275 = vadd.xlane.f32.xlu1 %v1274_v19 }
 0x64d   :  { %v2922_v34 = vpop.f32.mrb[8].mxu1 }
 0x64e   :  { %v1645_v37 = vpop.f32.mrb[9].mxu1 }
 0x64f   :  { %v1411_v56 = vpop.f32.mrb[10].mxu1 }
 0x650   :  { %v1646_v11 = vpop.f32.mrb[11].mxu1 }
 0x65a   :  { %1330 = vrot.lane.b32.xlu1 %v1273_v35, %s2063_s3 }
 0x65d   :  { %1313 = vrot.lane.b32.xlu0 %v2901_v54, %s2063_s3 }
 0x6d4   :  { %v1262_v6 = vpop.xlane.xlu0 %1261 }
 0x6d5   :  { %v1263_v8 = vrot.slane %v1262_v6, 4 }
 0x6d6   :  { %v1276_v9 = vpop.xlane.xlu1 %1275 }
 0x6d7   :  { %v1264_v10 = vadd.f32 %v1263_v8, %v1262_v6  ;;  %v1277_v12 = vrot.slane %v1276_v9, 4 }
 0x6d8   :  { %v1314_v14 = vpop.permute.xlu0 %1313 }
 0x6d9   :  { %v1265_v13 = vrot.slane %v1264_v10, 2  ;;  %v1278_v16 = vadd.f32 %v1277_v12, %v1276_v9  ;;  %v1316_v17 = vsel %vm2983_vm8, %v1314_v14, 0.0 }
 0x6da   :  { %v1331_v22 = vpop.permute.xlu1 %1330  ;;  %1317 = vadd.xlane.f32.xlu0 %v1316_v17 }
 0x6db   :  { %v1279_v24 = vrot.slane %v1278_v16, 2  ;;  %v1333_v38 = vsel %vm2984_vm9, %v1331_v22, 0.0  ;;  %v1266_v25 = vadd.f32 %v1265_v13, %v1264_v10 }
 0x6dc   :  { %1334 = vadd.xlane.f32.xlu1 %v1333_v38 }
 0x6dd   :  { %v1267_v26 = vrot.slane %v1266_v25, 1  ;;  %v1280_v27 = vadd.f32 %v1279_v24, %v1278_v16 }
 0x6df   :  { %v1268_v21 = vadd.f32 %v1267_v26, %v1266_v25  ;;  %v1281_v45 = vrot.slane %v1280_v27, 1 }
 0x6e1   :  { %1659 = vpush %v1268_v21  ;;  %v1282_v29 = vadd.f32 %v1281_v45, %v1280_v27 }
 0x6e3   :  { %1661 = vpush %v1282_v29 }
 0x6ed   :  { %1307 = vperm.xlu1 %2012, %v1304_v30  }
 0x6f0   :  { %1300 = vperm.xlu0 %2011, %v1297_v32  }
 0x6f4   :  { %1365 = vperm.xlu0 %2011, %v1362_v33  }
 0x712   :  { %s1660_s3 = spop %1659 }
 0x713   :  { %s1272_s23 = smul.f32 0.001953125, %s1660_s3 }
 0x714   :  { %s1662_s26 = spop %1661 }
 0x715   :  { %s1287_s8 = smul.f32 %s1272_s23, %s1272_s23  ;;  %v1289_v41 = vstv %s1272_s23 }
 0x716   :  { %s1286_s15 = smul.f32 0.001953125, %s1662_s26  ;;  %v1290_v42 = vsub.f32 %v2901_v54, %v1289_v41 }
 0x718   :  { %s1288_s7 = ssub.f32 %s1286_s15, %s1287_s8 }
 0x71a   :  { %s1291_s25 = sadd.f32 1e-05, %s1288_s7 }
 0x71c   :  { %v1292_v43 = vstv %s1291_s25 }
 0x71d   :  { %2017 = vrsqrt.f32 %v1292_v43 }
 0x727   :  { %v2018_v44 = vpop.eup %2017 }
 0x728   :  { %1663 = vpush %v2018_v44 }
 0x759   :  { %s1664_s10 = spop %1663 }
 0x75a   :  { %v1295_v63 = vstv %s1664_s10 }
 0x75b   :  { %v1296_v0 = vmul.f32 %v1295_v63, %v1290_v42 }
 0x767   :  { %v1318_v40 = vpop.xlane.xlu0 %1317 }
 0x768   :  { %v1319_v46 = vrot.slane %v1318_v40, 4 }
 0x769   :  { %v1335_v47 = vpop.xlane.xlu1 %1334 }
 0x76a   :  { %v1320_v48 = vadd.f32 %v1319_v46, %v1318_v40  ;;  %v1336_v49 = vrot.slane %v1335_v47, 4 }
 0x76c   :  { %v1321_v61 = vrot.slane %v1320_v48, 2  ;;  %v1337_v50 = vadd.f32 %v1336_v49, %v1335_v47 }
 0x76d   :  { %v1308_v23 = vpop.permute.xlu1 %1307 }
 0x76e   :  { %v1338_v20 = vrot.slane %v1337_v50, 2  ;;  %v1322_v51 = vadd.f32 %v1321_v61, %v1320_v48 }
 0x76f   :  { %v1301_v18 = vpop.permute.xlu0 %1300 }
 0x770   :  { %v1323_v52 = vrot.slane %v1322_v51, 1  ;;  %v1339_v36 = vadd.f32 %v1338_v20, %v1337_v50  ;;  %v1303_v1 = vmul.f32 %v1301_v18, %v1296_v0 }
 0x772   :  { %v1324_v53 = vadd.f32 %v1323_v52, %v1322_v51  ;;  %v1340_v55 = vrot.slane %v1339_v36, 1  ;;  %v1310_v15 = vadd.f32 %v1308_v23, %v1303_v1 }
 0x773   :  { %v1366_v31 = vpop.permute.xlu0 %1365 }
 0x774   :  { %1665 = vpush %v1324_v53  ;;  %v1341_v57 = vadd.f32 %v1340_v55, %v1339_v36  ;;  %v1311_v39 = vmax.f32 %v1310_v15, 0.0  ;;  %v1409_v35 = vadd.f32 %v2922_v34, %v1366_v31 }
 0x776   :  { %1667 = vpush %v1341_v57 }
 0x7a5   :  { %s1666_s2 = spop %1665 }
 0x7a6   :  { %s1328_s30 = smul.f32 0.001953125, %s1666_s2 }
 0x7a7   :  { %s1668_s0 = spop %1667 }
 0x7a8   :  { %s1346_s4 = smul.f32 %s1328_s30, %s1328_s30  ;;  %v1348_v58 = vstv %s1328_s30 }
 0x7a9   :  { %s1345_s5 = smul.f32 0.001953125, %s1668_s0  ;;  %v1349_v7 = vsub.f32 %v2901_v54, %v1348_v58 }
 0x7ab   :  { %s1347_s12 = ssub.f32 %s1345_s5, %s1346_s4 }
 0x7ad   :  { %s1350_s16 = sadd.f32 1e-05, %s1347_s12 }
 0x7af   :  { %v1351_v59 = vstv %s1350_s16 }
 0x7b0   :  { %2019 = vrsqrt.f32 %v1351_v59 }
 0x7ba   :  { %v2020_v62 = vpop.eup %2019 }
 0x7bb   :  { %1669 = vpush %v2020_v62 }
 0x7ec   :  { %s1670_s14 = spop %1669 }
 0x7ed   :  { %v1354_v2 = vstv %s1670_s14 }
 0x7ee   :  { %v1355_v5 = vmul.f32 %v1354_v2, %v1349_v7 }
 0x7f0   :  { %v1356_v28 = vmul.f32 %v1355_v5, %v1301_v18 }
 0x7f2   :  { %v1357_v3 = vadd.f32 %v1356_v28, %v1308_v23 }
 0x7f4   :  { %v1358_v54 = vmax.f32 %v1357_v3, 0.0 }
 0x7f6   :  { %v1359_v60 = vsel %vm2985_vm11, %v1311_v39, %v1358_v54 }
 0x7f7   :  { %v1414_v4 = vadd.f32 %v1409_v35, %v1359_v60 }
 0x7f9   :  { %1415 = vst [vmem:[#allocation2] sm:$0xff] %v1414_v4 }
 0x7fa   :  { %2032 = shalt.err (!%p2029_p4)
}
 0x7fb   :  { %s2033_s19 = scalar_lea.hbm %s2951_s11, 128 }
 0x7fc   :  { %p2034_p5 = scmp.ne.s32.totalorder %s2951_s11, %s2033_s19  ;;  %p2037_p6 = scmp.lt.u32.totalorder %s2033_s19, %s2951_s11 }
 0x7fe   :  { %p2039_p7 = pnand %p2037_p6, %p2034_p5 }
 0x800   :  { %2042 = shalt.err (!%p2039_p7)
}
 0x801   :  { %1425 = dma.vmem_to_hbm [thread:$0]  %s1423_s18, 128, %s2951_s11, [#allocation3]  }
 0x802   :  { %2043 = dma.done.wait [#allocation3], 128  }
 0x803   :  { %2044 = vsyncadd [#allocation3], 4294967168 }
 0x804   :  { %1429 = vsyncpa [#allocation3], 1 }

</bundles_post_ra>
